<compile_context>
chip_gen: v7x
topology: tpu7x:2x2x1
jax: 0.10.0
libtpu: 0.0.40
codegen_flags: <defaults>
</compile_context>

<pallas_src>
import functools

import numpy as np

import jax
import jax.numpy as jnp
from jax import lax
from jax.experimental import pallas as pl
from jax.experimental.pallas import tpu as pltpu


# --------------------------------------------------------------------------
# pltpu.roll shift-sign probe (cached): returns the multiplier s such that
# pltpu.roll(h, s*off, axis=1)[..., m] == h[..., m + off], or None to fall
# back to jnp.roll inside the kernel.
# --------------------------------------------------------------------------
@functools.lru_cache(maxsize=None)
def _roll_sign():
    try:
        def probe(o_ref):
            o_ref[...] = pltpu.roll(
                lax.broadcasted_iota(jnp.int32, (8, 128), 1), 1, axis=1)
        v = pl.pallas_call(
            probe, out_shape=jax.ShapeDtypeStruct((8, 128), jnp.int32))()
        v0 = int(jax.device_get(v)[0, 0])
        if v0 == 127:      # jnp.roll convention: out[i] = in[i - shift]
            return -1
        if v0 == 1:        # opposite convention: out[i] = in[i + shift]
            return 1
    except Exception:
        pass
    return None            # fall back to jnp.roll (slices + concat)


def _tap_masks(Bt, H, W):
    """(9, 1, Bt*H*W) bf16 validity masks (0/1) for the nine 3x3 conv taps."""
    yy, xx = np.meshgrid(np.arange(H), np.arange(W), indexing="ij")
    m = np.zeros((9, 1, Bt * H * W), np.float32)
    for ky in range(3):
        for kx in range(3):
            ok = ((yy + ky - 1 >= 0) & (yy + ky - 1 < H) &
                  (xx + kx - 1 >= 0) & (xx + kx - 1 < W))
            m[ky * 3 + kx, 0, :] = np.tile(ok.reshape(-1), Bt)
    return jnp.asarray(m, dtype=jnp.bfloat16)


def _choose_split(n_tasks, B, max_bt=32):
    """Batch-tile split: keep tiles big (amortise per-step overhead) but make
    the total parallel extent even when cheap (v7x two-TensorCore balance)."""
    n_bt = 1
    while B % n_bt != 0 or B // n_bt > max_bt:
        n_bt += 1
    if (n_tasks * n_bt) % 2 == 1 and B % (2 * n_bt) == 0:
        n_bt *= 2
    return n_bt


# --------------------------------------------------------------------------
# Fused Pallas kernel: trunk + per-task head + SPO+/MSE partial loss
# --------------------------------------------------------------------------
def _fused_kernel(xp_ref, w1_ref, s1_ref, wb1_ref, sb1_ref, wb2_ref, sb2_ref,
                  mk_ref, wh_ref, bh_ref, z_ref, c_ref, wt_ref, loss_ref,
                  *, W, B, Bt, d, use_mse, roll_sign):
    """One (task, batch-tile) grid step: trunk -> task head -> partial loss."""
    mtot = Bt * d
    offs = [(ky - 1) * W + (kx - 1) for ky in range(3) for kx in range(3)]

    def shifted(hb, off):
        # hb[c, m] -> hb[c, m + off]; out-of-image positions are masked later.
        if roll_sign is None:
            return jnp.roll(hb, -off, axis=1)
        return pltpu.roll(hb, shift=(roll_sign * off) % mtot, axis=1)

    def conv3x3(hb, w_ref):
        # 3x3 "same" conv = 9 accumulated MXU matmuls over rolled lane views.
        acc = None
        for k, off in enumerate(offs):
            src = hb if off == 0 else shifted(hb, off) * mk_ref[k]
            term = lax.dot_general(w_ref[k], src, (((1,), (0,)), ((), ())),
                                   preferred_element_type=jnp.float32)
            acc = term if acc is None else acc + term
        return acc

    # -- trunk conv1 (+ folded BN + ReLU); input was im2col'd by the wrapper --
    a1 = lax.dot_general(w1_ref[...], xp_ref[0, 0], (((1,), (0,)), ((), ())),
                         preferred_element_type=jnp.float32)
    h1 = jnp.maximum(a1 + s1_ref[...], 0.0)                   # (C, Bt*d) f32

    # -- BasicBlock: conv+BN+ReLU, conv+BN (+residual) + ReLU ------------------
    h2 = jnp.maximum(conv3x3(h1.astype(jnp.bfloat16), wb1_ref)
                     + sb1_ref[...], 0.0)
    h3 = jnp.maximum(conv3x3(h2.astype(jnp.bfloat16), wb2_ref)
                     + sb2_ref[...] + h1, 0.0)

    # -- task-i linear head -> lane-dense predicted-cost row (1, Bt*d) --------
    cp8 = lax.dot_general(wh_ref[0], h3, (((1,), (0,)), ((), ())),
                          preferred_element_type=jnp.float32)  # (8, Bt*d)
    cp = cp8[0:1, :] + bh_ref[0]

    # -- SPO+ (closed-form box-[0,1]^d inner LP) + optional MSE, partial sums --
    c = c_ref[0, 0]                                            # (1, Bt*d)
    wt = wt_ref[0, 0]
    q = 2.0 * cp - c
    zq = jnp.sum(jnp.minimum(q, 0.0), axis=1, keepdims=True)   # (1, 1)
    cw = jnp.sum(cp * wt, axis=1, keepdims=True)
    zb = jnp.sum(z_ref[0, 0], axis=1, keepdims=True)
    spo = (-zq + 2.0 * cw - zb) * (1.0 / B)

    lane = lax.broadcasted_iota(jnp.int32, (1, 128), 1)
    contrib = jnp.where(lane == 0, spo, 0.0)
    if use_mse:
        mse = jnp.sum((c - cp) ** 2, axis=1, keepdims=True) * (1.0 / (B * d))
        contrib = jnp.where(lane == 1, mse, contrib)
    loss_ref[0, 0] = contrib


# --------------------------------------------------------------------------
# Wrapper (single pallas_call per forward)
# --------------------------------------------------------------------------
@functools.partial(jax.jit, static_argnames=("n_bt", "use_mse", "roll_sign"))
def _forward(kp, xs, cs, ws, zs, *, n_bt, use_mse, roll_sign):
    T, B, Cin, H, W = xs.shape
    C = kp["s1"].shape[0]
    d = H * W
    Bt = B // n_bt
    mtot = Bt * d
    K1 = 9 * Cin

    # ---- wrapper glue (layout plumbing only): im2col of the raw Cin input and
    # regrouping so every kernel operand is channel-major / lane-dense.
    xpad = jnp.pad(xs, ((0, 0), (0, 0), (0, 0), (1, 1), (1, 1)))
    taps = [xpad[:, :, :, ky:ky + H, kx:kx + W]
            for ky in range(3) for kx in range(3)]
    xp = jnp.stack(taps, axis=2).reshape(T, B, K1, d)
    xp = xp.reshape(T, n_bt, Bt, K1, d).transpose(0, 1, 3, 2, 4)
    xp = xp.reshape(T, n_bt, K1, mtot).astype(jnp.bfloat16)

    c4 = cs.reshape(T, n_bt, 1, mtot)
    w4 = ws.reshape(T, n_bt, 1, mtot)
    z4 = zs.reshape(T, n_bt, 1, Bt)
    masks = _tap_masks(Bt, H, W)                    # compile-time constant

    kern = functools.partial(_fused_kernel, W=W, B=B, Bt=Bt, d=d,
                             use_mse=use_mse, roll_sign=roll_sign)
    rep2 = lambda i, t: (0, 0)            # shared weights: fetched once, resident
    rep3 = lambda i, t: (0, 0, 0)
    task3 = lambda i, t: (i, 0, 0)        # per-task head
    blk4 = lambda i, t: (i, t, 0, 0)      # per (task, batch-tile) operands/output

    out = pl.pallas_call(
        kern,
        out_shape=jax.ShapeDtypeStruct((T, n_bt, 1, 128), jnp.float32),
        grid=(T, n_bt),
        in_specs=[
            pl.BlockSpec((1, 1, K1, mtot), blk4),   # im2col'd conv1 input (bf16)
            pl.BlockSpec((C, K1), rep2),            # conv1 weight (BN scale folded)
            pl.BlockSpec((C, 1), rep2),             # conv1 BN shift
            pl.BlockSpec((9, C, C), rep3),          # block conv1 weight
            pl.BlockSpec((C, 1), rep2),             # block conv1 BN shift
            pl.BlockSpec((9, C, C), rep3),          # block conv2 weight
            pl.BlockSpec((C, 1), rep2),             # block conv2 BN shift
            pl.BlockSpec((9, 1, mtot), rep3),       # 3x3 tap validity masks
            pl.BlockSpec((1, 8, C), task3),         # task-i head rows
            pl.BlockSpec((1, 1, 1), task3),         # task-i head bias
            pl.BlockSpec((1, 1, 1, Bt), blk4),      # true optimal objectives
            pl.BlockSpec((1, 1, 1, mtot), blk4),    # true costs
            pl.BlockSpec((1, 1, 1, mtot), blk4),    # true optimal solutions
        ],
        out_specs=pl.BlockSpec((1, 1, 1, 128), blk4),
        compiler_params=pltpu.CompilerParams(
            dimension_semantics=("parallel", "parallel")),
    )(xp, kp["w1t"], kp["s1"], kp["wb1"], kp["sb1"], kp["wb2"], kp["sb2"],
      masks, kp["head_w"], kp["head_b"], z4, c4, w4)

    per_task = jnp.sum(out, axis=1)[:, 0, :]        # (T, 128)
    n_per = 2 if use_mse else 1
    # lane 0 = mean SPO+ loss, lane 1 = MSE; interleave to match torch.stack.
    return per_task[:, :n_per].reshape(T * n_per)


class PartialResNetSPO:
    """JAX/Pallas analogue of partialResNetSPO.forward (one fused kernel)."""

    def __init__(self, params, n_tasks, mse=False):
        self.n_tasks = n_tasks
        self.mse = mse
        cin, c = params["conv1_w"].shape[2], params["conv1_w"].shape[3]
        s1 = params["conv1_scale"].reshape(1, 1, 1, c)
        sb1 = params["blk_scale1"].reshape(1, 1, 1, c)
        sb2 = params["blk_scale2"].reshape(1, 1, 1, c)
        # One-time parameter preprocessing (glue, outside the hot path):
        #  * fold BN scale into the conv weights (f32 math), then cast bf16
        #  * conv1: (3,3,Cin,C) -> (C, 9*Cin) for one matmul vs im2col'd input
        #  * block convs: (3,3,Cin,Cout) -> (9, Cout, Cin) for per-tap matmuls
        #  * per-task head column broadcast to 8 rows (MXU-friendly M)
        self.kparams = {
            "w1t": jnp.transpose((params["conv1_w"] * s1)
                                 .reshape(9 * cin, c)).astype(jnp.bfloat16),
            "s1": params["conv1_shift"].reshape(c, 1),
            "wb1": jnp.transpose(params["blk_w1"] * sb1, (0, 1, 3, 2))
                      .reshape(9, c, c).astype(jnp.bfloat16),
            "sb1": params["blk_shift1"].reshape(c, 1),
            "wb2": jnp.transpose(params["blk_w2"] * sb2, (0, 1, 3, 2))
                      .reshape(9, c, c).astype(jnp.bfloat16),
            "sb2": params["blk_shift2"].reshape(c, 1),
            "head_w": jnp.tile(jnp.transpose(params["head_w"])[:, None, :],
                               (1, 8, 1)),                     # (n_tasks, 8, C)
            "head_b": params["head_b"].reshape(n_tasks, 1, 1),
        }

    def __call__(self, xs_nchw, cs, ws, zs):
        # xs_nchw: (n_tasks, B, Cin, H, W) PyTorch layout
        T, B = xs_nchw.shape[0], xs_nchw.shape[1]
        n_bt = _choose_split(self.n_tasks, B)
        return _forward(self.kparams, xs_nchw, cs, ws, jnp.reshape(zs, (T, B)),
                        n_bt=n_bt, use_mse=self.mse, roll_sign=_roll_sign())


# --------------------------------------------------------------------------
# Pure-JAX reference (correctness check) and deterministic parameter setup
# --------------------------------------------------------------------------
def _reference_forward(params, xs, cs, ws, zs, mse):
    T, B, Cin, H, W = xs.shape
    d = H * W
    conv = lambda a, w: lax.conv_general_dilated(
        a, w, (1, 1), "SAME", dimension_numbers=("NHWC", "HWIO", "NHWC"))
    x = jnp.transpose(xs.reshape(T * B, Cin, H, W), (0, 2, 3, 1))
    h1 = jax.nn.relu(conv(x, params["conv1_w"]) * params["conv1_scale"]
                     + params["conv1_shift"])
    h2 = jax.nn.relu(conv(h1, params["blk_w1"]) * params["blk_scale1"]
                     + params["blk_shift1"])
    h3 = jax.nn.relu(conv(h2, params["blk_w2"]) * params["blk_scale2"]
                     + params["blk_shift2"] + h1)
    feat = h3.reshape(T, B, d, -1)
    zf = zs.reshape(T, B)
    losses = []
    for i in range(T):
        cp = feat[i] @ params["head_w"][:, i] + params["head_b"][0, i]   # (B, d)
        q = 2.0 * cp - cs[i]
        spo = (-jnp.sum(jnp.minimum(q, 0.0), axis=1)
               + 2.0 * jnp.sum(cp * ws[i], axis=1) - zf[i])
        losses.append(jnp.mean(spo))
        if mse:
            losses.append(jnp.mean((cs[i] - cp) ** 2))
    return jnp.stack(losses)


def _bn_fold(kg, kb, km, kv, C):
    gamma = 1.0 + 0.1 * jax.random.normal(kg, (1, C), jnp.float32)
    beta = 0.1 * jax.random.normal(kb, (1, C), jnp.float32)
    mean = 0.1 * jax.random.normal(km, (1, C), jnp.float32)
    var = jnp.abs(1.0 + 0.1 * jax.random.normal(kv, (1, C), jnp.float32))
    scale = gamma / jnp.sqrt(var + 1e-5)
    shift = beta - mean * scale
    return scale, shift


def init_params(key, cin, c, n_tasks):
    ks = jax.random.split(key, 16)
    p = {}
    p["conv1_w"] = 0.1 * jax.random.normal(ks[0], (3, 3, cin, c), jnp.float32)
    p["conv1_scale"], p["conv1_shift"] = _bn_fold(ks[1], ks[2], ks[3], ks[4], c)
    p["blk_w1"] = 0.1 * jax.random.normal(ks[5], (3, 3, c, c), jnp.float32)
    p["blk_scale1"], p["blk_shift1"] = _bn_fold(ks[6], ks[7], ks[8], ks[9], c)
    p["blk_w2"] = 0.1 * jax.random.normal(ks[10], (3, 3, c, c), jnp.float32)
    p["blk_scale2"], p["blk_shift2"] = _bn_fold(ks[11], ks[12], ks[13], ks[14], c)
    hk1, hk2 = jax.random.split(ks[15])
    p["head_w"] = 0.1 * jax.random.normal(hk1, (c, n_tasks), jnp.float32)
    p["head_b"] = 0.1 * jax.random.normal(hk2, (1, n_tasks), jnp.float32)
    return p


if __name__ == "__main__":
    n_tasks, B, Cin, H, W, C = 3, 2, 4, 16, 16, 32
    d = H * W

    key = jax.random.PRNGKey(0)
    k_param, k_x, k_c = jax.random.split(key, 3)

    params = init_params(k_param, Cin, C, n_tasks)

    xs = jax.random.normal(k_x, (n_tasks, B, Cin, H, W), jnp.float32)   # NCHW
    cs = jax.random.normal(k_c, (n_tasks, B, d), jnp.float32)           # true costs
    ws = (cs < 0.0).astype(jnp.float32)              # box-LP optimal solutions
    zs = jnp.sum(jnp.minimum(cs, 0.0), axis=-1, keepdims=True)          # (T, B, 1)

    model = PartialResNetSPO(params, n_tasks=n_tasks, mse=True)
    loss = jax.block_until_ready(model(xs, cs, ws, zs))

    ref = _reference_forward(params, xs, cs, ws, zs, mse=True)

    assert loss.shape == (n_tasks * 2,)
    assert bool(jnp.all(jnp.isfinite(loss)))
    assert bool(jnp.allclose(loss, ref, rtol=5e-2, atol=5e-2)), (loss, ref)
    print("KERNEL_OK")
</pallas_src>

<mosaic_0001>
module attributes {stable_mosaic.version = 11 : i64} {
  func.func @_fused_kernel(%arg0: i32, %arg1: i32, %arg2: memref<1x1x36x256xbf16, #tpu.memory_space<vmem>>, %arg3: memref<32x36xbf16, #tpu.memory_space<vmem>>, %arg4: memref<32x1xf32, #tpu.memory_space<vmem>>, %arg5: memref<9x32x32xbf16, #tpu.memory_space<vmem>>, %arg6: memref<32x1xf32, #tpu.memory_space<vmem>>, %arg7: memref<9x32x32xbf16, #tpu.memory_space<vmem>>, %arg8: memref<32x1xf32, #tpu.memory_space<vmem>>, %arg9: memref<9x1x256xbf16, #tpu.memory_space<vmem>>, %arg10: memref<1x8x32xf32, #tpu.memory_space<vmem>>, %arg11: memref<1x1x1xf32, #tpu.memory_space<vmem>>, %arg12: memref<1x1x1x1xf32, #tpu.memory_space<vmem>>, %arg13: memref<1x1x1x256xf32, #tpu.memory_space<vmem>>, %arg14: memref<1x1x1x256xf32, #tpu.memory_space<vmem>>, %arg15: memref<1x1x1x128xf32, #tpu.memory_space<vmem>>) attributes {dimension_semantics = [#tpu.dimension_semantics<parallel>, #tpu.dimension_semantics<parallel>], iteration_bounds = array<i64: 3, 2>, scalar_prefetch = 0 : i64, scratch_operands = 0 : i64, tpu.core_type = #tpu.core_type<tc>, window_params = [{transform_indices = @transform_0, window_bounds = array<i64: 1, 1, 36, 256>}, {pipeline_mode = #tpu.pipeline_mode<synchronous>, transform_indices = @transform_1, window_bounds = array<i64: 32, 36>}, {pipeline_mode = #tpu.pipeline_mode<synchronous>, transform_indices = @transform_2, window_bounds = array<i64: 32, 1>}, {pipeline_mode = #tpu.pipeline_mode<synchronous>, transform_indices = @transform_3, window_bounds = array<i64: 9, 32, 32>}, {pipeline_mode = #tpu.pipeline_mode<synchronous>, transform_indices = @transform_4, window_bounds = array<i64: 32, 1>}, {pipeline_mode = #tpu.pipeline_mode<synchronous>, transform_indices = @transform_5, window_bounds = array<i64: 9, 32, 32>}, {pipeline_mode = #tpu.pipeline_mode<synchronous>, transform_indices = @transform_6, window_bounds = array<i64: 32, 1>}, {pipeline_mode = #tpu.pipeline_mode<synchronous>, transform_indices = @transform_7, window_bounds = array<i64: 9, 1, 256>}, {transform_indices = @transform_8, window_bounds = array<i64: 1, 8, 32>}, {transform_indices = @transform_9, window_bounds = array<i64: 1, 1, 1>}, {transform_indices = @transform_10, window_bounds = array<i64: 1, 1, 1, 1>}, {transform_indices = @transform_11, window_bounds = array<i64: 1, 1, 1, 256>}, {transform_indices = @transform_12, window_bounds = array<i64: 1, 1, 1, 256>}, {transform_indices = @transform_13, window_bounds = array<i64: 1, 1, 1, 128>}]} {
    %c0 = arith.constant 0 : index
    %c0_0 = arith.constant 0 : index
    %0 = vector.load %arg3[%c0, %c0_0] : memref<32x36xbf16, #tpu.memory_space<vmem>>, vector<32x36xbf16>
    %c0_1 = arith.constant 0 : index
    %c0_2 = arith.constant 0 : index
    %c0_3 = arith.constant 0 : index
    %c0_4 = arith.constant 0 : index
    %1 = vector.load %arg2[%c0_1, %c0_2, %c0_3, %c0_4] : memref<1x1x36x256xbf16, #tpu.memory_space<vmem>>, vector<1x1x36x256xbf16>
    %2 = vector.shape_cast %1 : vector<1x1x36x256xbf16> to vector<36x256xbf16>
    %cst = arith.constant dense<0.000000e+00> : vector<32x256xf32>
    %3 = tpu.matmul %0, %2, %cst {dimension_numbers = #tpu.dot_dimension_numbers<[1], [0], [0], [1], [0, 0, 1, 1], [], []>} : vector<32x36xbf16>, vector<36x256xbf16>, vector<32x256xf32> -> vector<32x256xf32>
    %c0_5 = arith.constant 0 : index
    %c0_6 = arith.constant 0 : index
    %4 = vector.load %arg4[%c0_5, %c0_6] : memref<32x1xf32, #tpu.memory_space<vmem>>, vector<32x1xf32>
    %5 = vector.broadcast %4 : vector<32x1xf32> to vector<32x256xf32>
    %6 = arith.addf %3, %5 : vector<32x256xf32>
    %cst_7 = arith.constant 0.000000e+00 : f32
    %7 = vector.broadcast %cst_7 : f32 to vector<32x256xf32>
    %8 = arith.maximumf %6, %7 : vector<32x256xf32>
    %9 = arith.truncf %8 : vector<32x256xf32> to vector<32x256xbf16>
    %10 = vector.extract_strided_slice %9 {offsets = [0, 239], sizes = [32, 17], strides = [1, 1]} : vector<32x256xbf16> to vector<32x17xbf16>
    %11 = vector.extract_strided_slice %9 {offsets = [0, 0], sizes = [32, 239], strides = [1, 1]} : vector<32x256xbf16> to vector<32x239xbf16>
    %12 = tpu.concatenate %10, %11 in 1 : vector<32x17xbf16>, vector<32x239xbf16> -> vector<32x256xbf16>
    %c0_8 = arith.constant 0 : index
    %c0_9 = arith.constant 0 : index
    %c0_10 = arith.constant 0 : index
    %13 = vector.load %arg9[%c0_8, %c0_9, %c0_10] : memref<9x1x256xbf16, #tpu.memory_space<vmem>>, vector<1x1x256xbf16>
    %14 = vector.shape_cast %13 : vector<1x1x256xbf16> to vector<1x256xbf16>
    %15 = vector.broadcast %14 : vector<1x256xbf16> to vector<32x256xbf16>
    %16 = arith.mulf %12, %15 : vector<32x256xbf16>
    %c0_11 = arith.constant 0 : index
    %c0_12 = arith.constant 0 : index
    %c0_13 = arith.constant 0 : index
    %17 = vector.load %arg5[%c0_11, %c0_12, %c0_13] : memref<9x32x32xbf16, #tpu.memory_space<vmem>>, vector<1x32x32xbf16>
    %18 = vector.shape_cast %17 : vector<1x32x32xbf16> to vector<32x32xbf16>
    %cst_14 = arith.constant dense<0.000000e+00> : vector<32x256xf32>
    %19 = tpu.matmul %18, %16, %cst_14 {dimension_numbers = #tpu.dot_dimension_numbers<[1], [0], [0], [1], [0, 0, 1, 1], [], []>} : vector<32x32xbf16>, vector<32x256xbf16>, vector<32x256xf32> -> vector<32x256xf32>
    %20 = vector.extract_strided_slice %9 {offsets = [0, 240], sizes = [32, 16], strides = [1, 1]} : vector<32x256xbf16> to vector<32x16xbf16>
    %21 = vector.extract_strided_slice %9 {offsets = [0, 0], sizes = [32, 240], strides = [1, 1]} : vector<32x256xbf16> to vector<32x240xbf16>
    %22 = tpu.concatenate %20, %21 in 1 : vector<32x16xbf16>, vector<32x240xbf16> -> vector<32x256xbf16>
    %c1 = arith.constant 1 : index
    %c0_15 = arith.constant 0 : index
    %c0_16 = arith.constant 0 : index
    %23 = vector.load %arg9[%c1, %c0_15, %c0_16] : memref<9x1x256xbf16, #tpu.memory_space<vmem>>, vector<1x1x256xbf16>
    %24 = vector.shape_cast %23 : vector<1x1x256xbf16> to vector<1x256xbf16>
    %25 = vector.broadcast %24 : vector<1x256xbf16> to vector<32x256xbf16>
    %26 = arith.mulf %22, %25 : vector<32x256xbf16>
    %c1_17 = arith.constant 1 : index
    %c0_18 = arith.constant 0 : index
    %c0_19 = arith.constant 0 : index
    %27 = vector.load %arg5[%c1_17, %c0_18, %c0_19] : memref<9x32x32xbf16, #tpu.memory_space<vmem>>, vector<1x32x32xbf16>
    %28 = vector.shape_cast %27 : vector<1x32x32xbf16> to vector<32x32xbf16>
    %cst_20 = arith.constant dense<0.000000e+00> : vector<32x256xf32>
    %29 = tpu.matmul %28, %26, %cst_20 {dimension_numbers = #tpu.dot_dimension_numbers<[1], [0], [0], [1], [0, 0, 1, 1], [], []>} : vector<32x32xbf16>, vector<32x256xbf16>, vector<32x256xf32> -> vector<32x256xf32>
    %30 = arith.addf %19, %29 : vector<32x256xf32>
    %31 = vector.extract_strided_slice %9 {offsets = [0, 241], sizes = [32, 15], strides = [1, 1]} : vector<32x256xbf16> to vector<32x15xbf16>
    %32 = vector.extract_strided_slice %9 {offsets = [0, 0], sizes = [32, 241], strides = [1, 1]} : vector<32x256xbf16> to vector<32x241xbf16>
    %33 = tpu.concatenate %31, %32 in 1 : vector<32x15xbf16>, vector<32x241xbf16> -> vector<32x256xbf16>
    %c2 = arith.constant 2 : index
    %c0_21 = arith.constant 0 : index
    %c0_22 = arith.constant 0 : index
    %34 = vector.load %arg9[%c2, %c0_21, %c0_22] : memref<9x1x256xbf16, #tpu.memory_space<vmem>>, vector<1x1x256xbf16>
    %35 = vector.shape_cast %34 : vector<1x1x256xbf16> to vector<1x256xbf16>
    %36 = vector.broadcast %35 : vector<1x256xbf16> to vector<32x256xbf16>
    %37 = arith.mulf %33, %36 : vector<32x256xbf16>
    %c2_23 = arith.constant 2 : index
    %c0_24 = arith.constant 0 : index
    %c0_25 = arith.constant 0 : index
    %38 = vector.load %arg5[%c2_23, %c0_24, %c0_25] : memref<9x32x32xbf16, #tpu.memory_space<vmem>>, vector<1x32x32xbf16>
    %39 = vector.shape_cast %38 : vector<1x32x32xbf16> to vector<32x32xbf16>
    %cst_26 = arith.constant dense<0.000000e+00> : vector<32x256xf32>
    %40 = tpu.matmul %39, %37, %cst_26 {dimension_numbers = #tpu.dot_dimension_numbers<[1], [0], [0], [1], [0, 0, 1, 1], [], []>} : vector<32x32xbf16>, vector<32x256xbf16>, vector<32x256xf32> -> vector<32x256xf32>
    %41 = arith.addf %30, %40 : vector<32x256xf32>
    %42 = vector.extract_strided_slice %9 {offsets = [0, 255], sizes = [32, 1], strides = [1, 1]} : vector<32x256xbf16> to vector<32x1xbf16>
    %43 = vector.extract_strided_slice %9 {offsets = [0, 0], sizes = [32, 255], strides = [1, 1]} : vector<32x256xbf16> to vector<32x255xbf16>
    %44 = tpu.concatenate %42, %43 in 1 : vector<32x1xbf16>, vector<32x255xbf16> -> vector<32x256xbf16>
    %c3 = arith.constant 3 : index
    %c0_27 = arith.constant 0 : index
    %c0_28 = arith.constant 0 : index
    %45 = vector.load %arg9[%c3, %c0_27, %c0_28] : memref<9x1x256xbf16, #tpu.memory_space<vmem>>, vector<1x1x256xbf16>
    %46 = vector.shape_cast %45 : vector<1x1x256xbf16> to vector<1x256xbf16>
    %47 = vector.broadcast %46 : vector<1x256xbf16> to vector<32x256xbf16>
    %48 = arith.mulf %44, %47 : vector<32x256xbf16>
    %c3_29 = arith.constant 3 : index
    %c0_30 = arith.constant 0 : index
    %c0_31 = arith.constant 0 : index
    %49 = vector.load %arg5[%c3_29, %c0_30, %c0_31] : memref<9x32x32xbf16, #tpu.memory_space<vmem>>, vector<1x32x32xbf16>
    %50 = vector.shape_cast %49 : vector<1x32x32xbf16> to vector<32x32xbf16>
    %cst_32 = arith.constant dense<0.000000e+00> : vector<32x256xf32>
    %51 = tpu.matmul %50, %48, %cst_32 {dimension_numbers = #tpu.dot_dimension_numbers<[1], [0], [0], [1], [0, 0, 1, 1], [], []>} : vector<32x32xbf16>, vector<32x256xbf16>, vector<32x256xf32> -> vector<32x256xf32>
    %52 = arith.addf %41, %51 : vector<32x256xf32>
    %c4 = arith.constant 4 : index
    %c0_33 = arith.constant 0 : index
    %c0_34 = arith.constant 0 : index
    %53 = vector.load %arg5[%c4, %c0_33, %c0_34] : memref<9x32x32xbf16, #tpu.memory_space<vmem>>, vector<1x32x32xbf16>
    %54 = vector.shape_cast %53 : vector<1x32x32xbf16> to vector<32x32xbf16>
    %cst_35 = arith.constant dense<0.000000e+00> : vector<32x256xf32>
    %55 = tpu.matmul %54, %9, %cst_35 {dimension_numbers = #tpu.dot_dimension_numbers<[1], [0], [0], [1], [0, 0, 1, 1], [], []>} : vector<32x32xbf16>, vector<32x256xbf16>, vector<32x256xf32> -> vector<32x256xf32>
    %56 = arith.addf %52, %55 : vector<32x256xf32>
    %57 = vector.extract_strided_slice %9 {offsets = [0, 1], sizes = [32, 255], strides = [1, 1]} : vector<32x256xbf16> to vector<32x255xbf16>
    %58 = vector.extract_strided_slice %9 {offsets = [0, 0], sizes = [32, 1], strides = [1, 1]} : vector<32x256xbf16> to vector<32x1xbf16>
    %59 = tpu.concatenate %57, %58 in 1 : vector<32x255xbf16>, vector<32x1xbf16> -> vector<32x256xbf16>
    %c5 = arith.constant 5 : index
    %c0_36 = arith.constant 0 : index
    %c0_37 = arith.constant 0 : index
    %60 = vector.load %arg9[%c5, %c0_36, %c0_37] : memref<9x1x256xbf16, #tpu.memory_space<vmem>>, vector<1x1x256xbf16>
    %61 = vector.shape_cast %60 : vector<1x1x256xbf16> to vector<1x256xbf16>
    %62 = vector.broadcast %61 : vector<1x256xbf16> to vector<32x256xbf16>
    %63 = arith.mulf %59, %62 : vector<32x256xbf16>
    %c5_38 = arith.constant 5 : index
    %c0_39 = arith.constant 0 : index
    %c0_40 = arith.constant 0 : index
    %64 = vector.load %arg5[%c5_38, %c0_39, %c0_40] : memref<9x32x32xbf16, #tpu.memory_space<vmem>>, vector<1x32x32xbf16>
    %65 = vector.shape_cast %64 : vector<1x32x32xbf16> to vector<32x32xbf16>
    %cst_41 = arith.constant dense<0.000000e+00> : vector<32x256xf32>
    %66 = tpu.matmul %65, %63, %cst_41 {dimension_numbers = #tpu.dot_dimension_numbers<[1], [0], [0], [1], [0, 0, 1, 1], [], []>} : vector<32x32xbf16>, vector<32x256xbf16>, vector<32x256xf32> -> vector<32x256xf32>
    %67 = arith.addf %56, %66 : vector<32x256xf32>
    %68 = vector.extract_strided_slice %9 {offsets = [0, 15], sizes = [32, 241], strides = [1, 1]} : vector<32x256xbf16> to vector<32x241xbf16>
    %69 = vector.extract_strided_slice %9 {offsets = [0, 0], sizes = [32, 15], strides = [1, 1]} : vector<32x256xbf16> to vector<32x15xbf16>
    %70 = tpu.concatenate %68, %69 in 1 : vector<32x241xbf16>, vector<32x15xbf16> -> vector<32x256xbf16>
    %c6 = arith.constant 6 : index
    %c0_42 = arith.constant 0 : index
    %c0_43 = arith.constant 0 : index
    %71 = vector.load %arg9[%c6, %c0_42, %c0_43] : memref<9x1x256xbf16, #tpu.memory_space<vmem>>, vector<1x1x256xbf16>
    %72 = vector.shape_cast %71 : vector<1x1x256xbf16> to vector<1x256xbf16>
    %73 = vector.broadcast %72 : vector<1x256xbf16> to vector<32x256xbf16>
    %74 = arith.mulf %70, %73 : vector<32x256xbf16>
    %c6_44 = arith.constant 6 : index
    %c0_45 = arith.constant 0 : index
    %c0_46 = arith.constant 0 : index
    %75 = vector.load %arg5[%c6_44, %c0_45, %c0_46] : memref<9x32x32xbf16, #tpu.memory_space<vmem>>, vector<1x32x32xbf16>
    %76 = vector.shape_cast %75 : vector<1x32x32xbf16> to vector<32x32xbf16>
    %cst_47 = arith.constant dense<0.000000e+00> : vector<32x256xf32>
    %77 = tpu.matmul %76, %74, %cst_47 {dimension_numbers = #tpu.dot_dimension_numbers<[1], [0], [0], [1], [0, 0, 1, 1], [], []>} : vector<32x32xbf16>, vector<32x256xbf16>, vector<32x256xf32> -> vector<32x256xf32>
    %78 = arith.addf %67, %77 : vector<32x256xf32>
    %79 = vector.extract_strided_slice %9 {offsets = [0, 16], sizes = [32, 240], strides = [1, 1]} : vector<32x256xbf16> to vector<32x240xbf16>
    %80 = vector.extract_strided_slice %9 {offsets = [0, 0], sizes = [32, 16], strides = [1, 1]} : vector<32x256xbf16> to vector<32x16xbf16>
    %81 = tpu.concatenate %79, %80 in 1 : vector<32x240xbf16>, vector<32x16xbf16> -> vector<32x256xbf16>
    %c7 = arith.constant 7 : index
    %c0_48 = arith.constant 0 : index
    %c0_49 = arith.constant 0 : index
    %82 = vector.load %arg9[%c7, %c0_48, %c0_49] : memref<9x1x256xbf16, #tpu.memory_space<vmem>>, vector<1x1x256xbf16>
    %83 = vector.shape_cast %82 : vector<1x1x256xbf16> to vector<1x256xbf16>
    %84 = vector.broadcast %83 : vector<1x256xbf16> to vector<32x256xbf16>
    %85 = arith.mulf %81, %84 : vector<32x256xbf16>
    %c7_50 = arith.constant 7 : index
    %c0_51 = arith.constant 0 : index
    %c0_52 = arith.constant 0 : index
    %86 = vector.load %arg5[%c7_50, %c0_51, %c0_52] : memref<9x32x32xbf16, #tpu.memory_space<vmem>>, vector<1x32x32xbf16>
    %87 = vector.shape_cast %86 : vector<1x32x32xbf16> to vector<32x32xbf16>
    %cst_53 = arith.constant dense<0.000000e+00> : vector<32x256xf32>
    %88 = tpu.matmul %87, %85, %cst_53 {dimension_numbers = #tpu.dot_dimension_numbers<[1], [0], [0], [1], [0, 0, 1, 1], [], []>} : vector<32x32xbf16>, vector<32x256xbf16>, vector<32x256xf32> -> vector<32x256xf32>
    %89 = arith.addf %78, %88 : vector<32x256xf32>
    %90 = vector.extract_strided_slice %9 {offsets = [0, 17], sizes = [32, 239], strides = [1, 1]} : vector<32x256xbf16> to vector<32x239xbf16>
    %91 = vector.extract_strided_slice %9 {offsets = [0, 0], sizes = [32, 17], strides = [1, 1]} : vector<32x256xbf16> to vector<32x17xbf16>
    %92 = tpu.concatenate %90, %91 in 1 : vector<32x239xbf16>, vector<32x17xbf16> -> vector<32x256xbf16>
    %c8 = arith.constant 8 : index
    %c0_54 = arith.constant 0 : index
    %c0_55 = arith.constant 0 : index
    %93 = vector.load %arg9[%c8, %c0_54, %c0_55] : memref<9x1x256xbf16, #tpu.memory_space<vmem>>, vector<1x1x256xbf16>
    %94 = vector.shape_cast %93 : vector<1x1x256xbf16> to vector<1x256xbf16>
    %95 = vector.broadcast %94 : vector<1x256xbf16> to vector<32x256xbf16>
    %96 = arith.mulf %92, %95 : vector<32x256xbf16>
    %c8_56 = arith.constant 8 : index
    %c0_57 = arith.constant 0 : index
    %c0_58 = arith.constant 0 : index
    %97 = vector.load %arg5[%c8_56, %c0_57, %c0_58] : memref<9x32x32xbf16, #tpu.memory_space<vmem>>, vector<1x32x32xbf16>
    %98 = vector.shape_cast %97 : vector<1x32x32xbf16> to vector<32x32xbf16>
    %cst_59 = arith.constant dense<0.000000e+00> : vector<32x256xf32>
    %99 = tpu.matmul %98, %96, %cst_59 {dimension_numbers = #tpu.dot_dimension_numbers<[1], [0], [0], [1], [0, 0, 1, 1], [], []>} : vector<32x32xbf16>, vector<32x256xbf16>, vector<32x256xf32> -> vector<32x256xf32>
    %100 = arith.addf %89, %99 : vector<32x256xf32>
    %c0_60 = arith.constant 0 : index
    %c0_61 = arith.constant 0 : index
    %101 = vector.load %arg6[%c0_60, %c0_61] : memref<32x1xf32, #tpu.memory_space<vmem>>, vector<32x1xf32>
    %102 = vector.broadcast %101 : vector<32x1xf32> to vector<32x256xf32>
    %103 = arith.addf %100, %102 : vector<32x256xf32>
    %cst_62 = arith.constant 0.000000e+00 : f32
    %104 = vector.broadcast %cst_62 : f32 to vector<32x256xf32>
    %105 = arith.maximumf %103, %104 : vector<32x256xf32>
    %106 = arith.truncf %105 : vector<32x256xf32> to vector<32x256xbf16>
    %107 = vector.extract_strided_slice %106 {offsets = [0, 239], sizes = [32, 17], strides = [1, 1]} : vector<32x256xbf16> to vector<32x17xbf16>
    %108 = vector.extract_strided_slice %106 {offsets = [0, 0], sizes = [32, 239], strides = [1, 1]} : vector<32x256xbf16> to vector<32x239xbf16>
    %109 = tpu.concatenate %107, %108 in 1 : vector<32x17xbf16>, vector<32x239xbf16> -> vector<32x256xbf16>
    %c0_63 = arith.constant 0 : index
    %c0_64 = arith.constant 0 : index
    %c0_65 = arith.constant 0 : index
    %110 = vector.load %arg9[%c0_63, %c0_64, %c0_65] : memref<9x1x256xbf16, #tpu.memory_space<vmem>>, vector<1x1x256xbf16>
    %111 = vector.shape_cast %110 : vector<1x1x256xbf16> to vector<1x256xbf16>
    %112 = vector.broadcast %111 : vector<1x256xbf16> to vector<32x256xbf16>
    %113 = arith.mulf %109, %112 : vector<32x256xbf16>
    %c0_66 = arith.constant 0 : index
    %c0_67 = arith.constant 0 : index
    %c0_68 = arith.constant 0 : index
    %114 = vector.load %arg7[%c0_66, %c0_67, %c0_68] : memref<9x32x32xbf16, #tpu.memory_space<vmem>>, vector<1x32x32xbf16>
    %115 = vector.shape_cast %114 : vector<1x32x32xbf16> to vector<32x32xbf16>
    %cst_69 = arith.constant dense<0.000000e+00> : vector<32x256xf32>
    %116 = tpu.matmul %115, %113, %cst_69 {dimension_numbers = #tpu.dot_dimension_numbers<[1], [0], [0], [1], [0, 0, 1, 1], [], []>} : vector<32x32xbf16>, vector<32x256xbf16>, vector<32x256xf32> -> vector<32x256xf32>
    %117 = vector.extract_strided_slice %106 {offsets = [0, 240], sizes = [32, 16], strides = [1, 1]} : vector<32x256xbf16> to vector<32x16xbf16>
    %118 = vector.extract_strided_slice %106 {offsets = [0, 0], sizes = [32, 240], strides = [1, 1]} : vector<32x256xbf16> to vector<32x240xbf16>
    %119 = tpu.concatenate %117, %118 in 1 : vector<32x16xbf16>, vector<32x240xbf16> -> vector<32x256xbf16>
    %c1_70 = arith.constant 1 : index
    %c0_71 = arith.constant 0 : index
    %c0_72 = arith.constant 0 : index
    %120 = vector.load %arg9[%c1_70, %c0_71, %c0_72] : memref<9x1x256xbf16, #tpu.memory_space<vmem>>, vector<1x1x256xbf16>
    %121 = vector.shape_cast %120 : vector<1x1x256xbf16> to vector<1x256xbf16>
    %122 = vector.broadcast %121 : vector<1x256xbf16> to vector<32x256xbf16>
    %123 = arith.mulf %119, %122 : vector<32x256xbf16>
    %c1_73 = arith.constant 1 : index
    %c0_74 = arith.constant 0 : index
    %c0_75 = arith.constant 0 : index
    %124 = vector.load %arg7[%c1_73, %c0_74, %c0_75] : memref<9x32x32xbf16, #tpu.memory_space<vmem>>, vector<1x32x32xbf16>
    %125 = vector.shape_cast %124 : vector<1x32x32xbf16> to vector<32x32xbf16>
    %cst_76 = arith.constant dense<0.000000e+00> : vector<32x256xf32>
    %126 = tpu.matmul %125, %123, %cst_76 {dimension_numbers = #tpu.dot_dimension_numbers<[1], [0], [0], [1], [0, 0, 1, 1], [], []>} : vector<32x32xbf16>, vector<32x256xbf16>, vector<32x256xf32> -> vector<32x256xf32>
    %127 = arith.addf %116, %126 : vector<32x256xf32>
    %128 = vector.extract_strided_slice %106 {offsets = [0, 241], sizes = [32, 15], strides = [1, 1]} : vector<32x256xbf16> to vector<32x15xbf16>
    %129 = vector.extract_strided_slice %106 {offsets = [0, 0], sizes = [32, 241], strides = [1, 1]} : vector<32x256xbf16> to vector<32x241xbf16>
    %130 = tpu.concatenate %128, %129 in 1 : vector<32x15xbf16>, vector<32x241xbf16> -> vector<32x256xbf16>
    %c2_77 = arith.constant 2 : index
    %c0_78 = arith.constant 0 : index
    %c0_79 = arith.constant 0 : index
    %131 = vector.load %arg9[%c2_77, %c0_78, %c0_79] : memref<9x1x256xbf16, #tpu.memory_space<vmem>>, vector<1x1x256xbf16>
    %132 = vector.shape_cast %131 : vector<1x1x256xbf16> to vector<1x256xbf16>
    %133 = vector.broadcast %132 : vector<1x256xbf16> to vector<32x256xbf16>
    %134 = arith.mulf %130, %133 : vector<32x256xbf16>
    %c2_80 = arith.constant 2 : index
    %c0_81 = arith.constant 0 : index
    %c0_82 = arith.constant 0 : index
    %135 = vector.load %arg7[%c2_80, %c0_81, %c0_82] : memref<9x32x32xbf16, #tpu.memory_space<vmem>>, vector<1x32x32xbf16>
    %136 = vector.shape_cast %135 : vector<1x32x32xbf16> to vector<32x32xbf16>
    %cst_83 = arith.constant dense<0.000000e+00> : vector<32x256xf32>
    %137 = tpu.matmul %136, %134, %cst_83 {dimension_numbers = #tpu.dot_dimension_numbers<[1], [0], [0], [1], [0, 0, 1, 1], [], []>} : vector<32x32xbf16>, vector<32x256xbf16>, vector<32x256xf32> -> vector<32x256xf32>
    %138 = arith.addf %127, %137 : vector<32x256xf32>
    %139 = vector.extract_strided_slice %106 {offsets = [0, 255], sizes = [32, 1], strides = [1, 1]} : vector<32x256xbf16> to vector<32x1xbf16>
    %140 = vector.extract_strided_slice %106 {offsets = [0, 0], sizes = [32, 255], strides = [1, 1]} : vector<32x256xbf16> to vector<32x255xbf16>
    %141 = tpu.concatenate %139, %140 in 1 : vector<32x1xbf16>, vector<32x255xbf16> -> vector<32x256xbf16>
    %c3_84 = arith.constant 3 : index
    %c0_85 = arith.constant 0 : index
    %c0_86 = arith.constant 0 : index
    %142 = vector.load %arg9[%c3_84, %c0_85, %c0_86] : memref<9x1x256xbf16, #tpu.memory_space<vmem>>, vector<1x1x256xbf16>
    %143 = vector.shape_cast %142 : vector<1x1x256xbf16> to vector<1x256xbf16>
    %144 = vector.broadcast %143 : vector<1x256xbf16> to vector<32x256xbf16>
    %145 = arith.mulf %141, %144 : vector<32x256xbf16>
    %c3_87 = arith.constant 3 : index
    %c0_88 = arith.constant 0 : index
    %c0_89 = arith.constant 0 : index
    %146 = vector.load %arg7[%c3_87, %c0_88, %c0_89] : memref<9x32x32xbf16, #tpu.memory_space<vmem>>, vector<1x32x32xbf16>
    %147 = vector.shape_cast %146 : vector<1x32x32xbf16> to vector<32x32xbf16>
    %cst_90 = arith.constant dense<0.000000e+00> : vector<32x256xf32>
    %148 = tpu.matmul %147, %145, %cst_90 {dimension_numbers = #tpu.dot_dimension_numbers<[1], [0], [0], [1], [0, 0, 1, 1], [], []>} : vector<32x32xbf16>, vector<32x256xbf16>, vector<32x256xf32> -> vector<32x256xf32>
    %149 = arith.addf %138, %148 : vector<32x256xf32>
    %c4_91 = arith.constant 4 : index
    %c0_92 = arith.constant 0 : index
    %c0_93 = arith.constant 0 : index
    %150 = vector.load %arg7[%c4_91, %c0_92, %c0_93] : memref<9x32x32xbf16, #tpu.memory_space<vmem>>, vector<1x32x32xbf16>
    %151 = vector.shape_cast %150 : vector<1x32x32xbf16> to vector<32x32xbf16>
    %cst_94 = arith.constant dense<0.000000e+00> : vector<32x256xf32>
    %152 = tpu.matmul %151, %106, %cst_94 {dimension_numbers = #tpu.dot_dimension_numbers<[1], [0], [0], [1], [0, 0, 1, 1], [], []>} : vector<32x32xbf16>, vector<32x256xbf16>, vector<32x256xf32> -> vector<32x256xf32>
    %153 = arith.addf %149, %152 : vector<32x256xf32>
    %154 = vector.extract_strided_slice %106 {offsets = [0, 1], sizes = [32, 255], strides = [1, 1]} : vector<32x256xbf16> to vector<32x255xbf16>
    %155 = vector.extract_strided_slice %106 {offsets = [0, 0], sizes = [32, 1], strides = [1, 1]} : vector<32x256xbf16> to vector<32x1xbf16>
    %156 = tpu.concatenate %154, %155 in 1 : vector<32x255xbf16>, vector<32x1xbf16> -> vector<32x256xbf16>
    %c5_95 = arith.constant 5 : index
    %c0_96 = arith.constant 0 : index
    %c0_97 = arith.constant 0 : index
    %157 = vector.load %arg9[%c5_95, %c0_96, %c0_97] : memref<9x1x256xbf16, #tpu.memory_space<vmem>>, vector<1x1x256xbf16>
    %158 = vector.shape_cast %157 : vector<1x1x256xbf16> to vector<1x256xbf16>
    %159 = vector.broadcast %158 : vector<1x256xbf16> to vector<32x256xbf16>
    %160 = arith.mulf %156, %159 : vector<32x256xbf16>
    %c5_98 = arith.constant 5 : index
    %c0_99 = arith.constant 0 : index
    %c0_100 = arith.constant 0 : index
    %161 = vector.load %arg7[%c5_98, %c0_99, %c0_100] : memref<9x32x32xbf16, #tpu.memory_space<vmem>>, vector<1x32x32xbf16>
    %162 = vector.shape_cast %161 : vector<1x32x32xbf16> to vector<32x32xbf16>
    %cst_101 = arith.constant dense<0.000000e+00> : vector<32x256xf32>
    %163 = tpu.matmul %162, %160, %cst_101 {dimension_numbers = #tpu.dot_dimension_numbers<[1], [0], [0], [1], [0, 0, 1, 1], [], []>} : vector<32x32xbf16>, vector<32x256xbf16>, vector<32x256xf32> -> vector<32x256xf32>
    %164 = arith.addf %153, %163 : vector<32x256xf32>
    %165 = vector.extract_strided_slice %106 {offsets = [0, 15], sizes = [32, 241], strides = [1, 1]} : vector<32x256xbf16> to vector<32x241xbf16>
    %166 = vector.extract_strided_slice %106 {offsets = [0, 0], sizes = [32, 15], strides = [1, 1]} : vector<32x256xbf16> to vector<32x15xbf16>
    %167 = tpu.concatenate %165, %166 in 1 : vector<32x241xbf16>, vector<32x15xbf16> -> vector<32x256xbf16>
    %c6_102 = arith.constant 6 : index
    %c0_103 = arith.constant 0 : index
    %c0_104 = arith.constant 0 : index
    %168 = vector.load %arg9[%c6_102, %c0_103, %c0_104] : memref<9x1x256xbf16, #tpu.memory_space<vmem>>, vector<1x1x256xbf16>
    %169 = vector.shape_cast %168 : vector<1x1x256xbf16> to vector<1x256xbf16>
    %170 = vector.broadcast %169 : vector<1x256xbf16> to vector<32x256xbf16>
    %171 = arith.mulf %167, %170 : vector<32x256xbf16>
    %c6_105 = arith.constant 6 : index
    %c0_106 = arith.constant 0 : index
    %c0_107 = arith.constant 0 : index
    %172 = vector.load %arg7[%c6_105, %c0_106, %c0_107] : memref<9x32x32xbf16, #tpu.memory_space<vmem>>, vector<1x32x32xbf16>
    %173 = vector.shape_cast %172 : vector<1x32x32xbf16> to vector<32x32xbf16>
    %cst_108 = arith.constant dense<0.000000e+00> : vector<32x256xf32>
    %174 = tpu.matmul %173, %171, %cst_108 {dimension_numbers = #tpu.dot_dimension_numbers<[1], [0], [0], [1], [0, 0, 1, 1], [], []>} : vector<32x32xbf16>, vector<32x256xbf16>, vector<32x256xf32> -> vector<32x256xf32>
    %175 = arith.addf %164, %174 : vector<32x256xf32>
    %176 = vector.extract_strided_slice %106 {offsets = [0, 16], sizes = [32, 240], strides = [1, 1]} : vector<32x256xbf16> to vector<32x240xbf16>
    %177 = vector.extract_strided_slice %106 {offsets = [0, 0], sizes = [32, 16], strides = [1, 1]} : vector<32x256xbf16> to vector<32x16xbf16>
    %178 = tpu.concatenate %176, %177 in 1 : vector<32x240xbf16>, vector<32x16xbf16> -> vector<32x256xbf16>
    %c7_109 = arith.constant 7 : index
    %c0_110 = arith.constant 0 : index
    %c0_111 = arith.constant 0 : index
    %179 = vector.load %arg9[%c7_109, %c0_110, %c0_111] : memref<9x1x256xbf16, #tpu.memory_space<vmem>>, vector<1x1x256xbf16>
    %180 = vector.shape_cast %179 : vector<1x1x256xbf16> to vector<1x256xbf16>
    %181 = vector.broadcast %180 : vector<1x256xbf16> to vector<32x256xbf16>
    %182 = arith.mulf %178, %181 : vector<32x256xbf16>
    %c7_112 = arith.constant 7 : index
    %c0_113 = arith.constant 0 : index
    %c0_114 = arith.constant 0 : index
    %183 = vector.load %arg7[%c7_112, %c0_113, %c0_114] : memref<9x32x32xbf16, #tpu.memory_space<vmem>>, vector<1x32x32xbf16>
    %184 = vector.shape_cast %183 : vector<1x32x32xbf16> to vector<32x32xbf16>
    %cst_115 = arith.constant dense<0.000000e+00> : vector<32x256xf32>
    %185 = tpu.matmul %184, %182, %cst_115 {dimension_numbers = #tpu.dot_dimension_numbers<[1], [0], [0], [1], [0, 0, 1, 1], [], []>} : vector<32x32xbf16>, vector<32x256xbf16>, vector<32x256xf32> -> vector<32x256xf32>
    %186 = arith.addf %175, %185 : vector<32x256xf32>
    %187 = vector.extract_strided_slice %106 {offsets = [0, 17], sizes = [32, 239], strides = [1, 1]} : vector<32x256xbf16> to vector<32x239xbf16>
    %188 = vector.extract_strided_slice %106 {offsets = [0, 0], sizes = [32, 17], strides = [1, 1]} : vector<32x256xbf16> to vector<32x17xbf16>
    %189 = tpu.concatenate %187, %188 in 1 : vector<32x239xbf16>, vector<32x17xbf16> -> vector<32x256xbf16>
    %c8_116 = arith.constant 8 : index
    %c0_117 = arith.constant 0 : index
    %c0_118 = arith.constant 0 : index
    %190 = vector.load %arg9[%c8_116, %c0_117, %c0_118] : memref<9x1x256xbf16, #tpu.memory_space<vmem>>, vector<1x1x256xbf16>
    %191 = vector.shape_cast %190 : vector<1x1x256xbf16> to vector<1x256xbf16>
    %192 = vector.broadcast %191 : vector<1x256xbf16> to vector<32x256xbf16>
    %193 = arith.mulf %189, %192 : vector<32x256xbf16>
    %c8_119 = arith.constant 8 : index
    %c0_120 = arith.constant 0 : index
    %c0_121 = arith.constant 0 : index
    %194 = vector.load %arg7[%c8_119, %c0_120, %c0_121] : memref<9x32x32xbf16, #tpu.memory_space<vmem>>, vector<1x32x32xbf16>
    %195 = vector.shape_cast %194 : vector<1x32x32xbf16> to vector<32x32xbf16>
    %cst_122 = arith.constant dense<0.000000e+00> : vector<32x256xf32>
    %196 = tpu.matmul %195, %193, %cst_122 {dimension_numbers = #tpu.dot_dimension_numbers<[1], [0], [0], [1], [0, 0, 1, 1], [], []>} : vector<32x32xbf16>, vector<32x256xbf16>, vector<32x256xf32> -> vector<32x256xf32>
    %197 = arith.addf %186, %196 : vector<32x256xf32>
    %c0_123 = arith.constant 0 : index
    %c0_124 = arith.constant 0 : index
    %198 = vector.load %arg8[%c0_123, %c0_124] : memref<32x1xf32, #tpu.memory_space<vmem>>, vector<32x1xf32>
    %199 = vector.broadcast %198 : vector<32x1xf32> to vector<32x256xf32>
    %200 = arith.addf %197, %199 : vector<32x256xf32>
    %201 = arith.addf %200, %8 : vector<32x256xf32>
    %cst_125 = arith.constant 0.000000e+00 : f32
    %202 = vector.broadcast %cst_125 : f32 to vector<32x256xf32>
    %203 = arith.maximumf %201, %202 : vector<32x256xf32>
    %c0_126 = arith.constant 0 : index
    %c0_127 = arith.constant 0 : index
    %c0_128 = arith.constant 0 : index
    %204 = vector.load %arg10[%c0_126, %c0_127, %c0_128] : memref<1x8x32xf32, #tpu.memory_space<vmem>>, vector<1x8x32xf32>
    %205 = vector.shape_cast %204 : vector<1x8x32xf32> to vector<8x32xf32>
    %cst_129 = arith.constant dense<0.000000e+00> : vector<8x256xf32>
    %206 = tpu.matmul %205, %203, %cst_129 {dimension_numbers = #tpu.dot_dimension_numbers<[1], [0], [0], [1], [0, 0, 1, 1], [], []>} : vector<8x32xf32>, vector<32x256xf32>, vector<8x256xf32> -> vector<8x256xf32>
    %207 = vector.extract_strided_slice %206 {offsets = [0, 0], sizes = [1, 256], strides = [1, 1]} : vector<8x256xf32> to vector<1x256xf32>
    %c0_130 = arith.constant 0 : index
    %c0_131 = arith.constant 0 : index
    %c0_132 = arith.constant 0 : index
    %208 = vector.load %arg11[%c0_130, %c0_131, %c0_132] : memref<1x1x1xf32, #tpu.memory_space<vmem>>, vector<1x1x1xf32>
    %209 = vector.shape_cast %208 : vector<1x1x1xf32> to vector<1x1xf32>
    %210 = vector.broadcast %209 : vector<1x1xf32> to vector<1x256xf32>
    %211 = arith.addf %207, %210 : vector<1x256xf32>
    %c0_133 = arith.constant 0 : index
    %c0_134 = arith.constant 0 : index
    %c0_135 = arith.constant 0 : index
    %c0_136 = arith.constant 0 : index
    %212 = vector.load %arg13[%c0_133, %c0_134, %c0_135, %c0_136] : memref<1x1x1x256xf32, #tpu.memory_space<vmem>>, vector<1x1x1x256xf32>
    %213 = vector.shape_cast %212 : vector<1x1x1x256xf32> to vector<1x256xf32>
    %c0_137 = arith.constant 0 : index
    %c0_138 = arith.constant 0 : index
    %c0_139 = arith.constant 0 : index
    %c0_140 = arith.constant 0 : index
    %214 = vector.load %arg14[%c0_137, %c0_138, %c0_139, %c0_140] : memref<1x1x1x256xf32, #tpu.memory_space<vmem>>, vector<1x1x1x256xf32>
    %215 = vector.shape_cast %214 : vector<1x1x1x256xf32> to vector<1x256xf32>
    %cst_141 = arith.constant 2.000000e+00 : f32
    %216 = vector.broadcast %cst_141 : f32 to vector<1x256xf32>
    %217 = arith.mulf %216, %211 : vector<1x256xf32>
    %218 = arith.subf %217, %213 : vector<1x256xf32>
    %cst_142 = arith.constant 0.000000e+00 : f32
    %219 = vector.broadcast %cst_142 : f32 to vector<1x256xf32>
    %220 = arith.minimumf %218, %219 : vector<1x256xf32>
    %cst_143 = arith.constant dense<0.000000e+00> : vector<1xf32>
    %221 = vector.multi_reduction <add>, %220, %cst_143 [1] : vector<1x256xf32> to vector<1xf32>
    %222 = vector.shape_cast %221 : vector<1xf32> to vector<1x1xf32>
    %223 = arith.mulf %211, %215 : vector<1x256xf32>
    %cst_144 = arith.constant dense<0.000000e+00> : vector<1xf32>
    %224 = vector.multi_reduction <add>, %223, %cst_144 [1] : vector<1x256xf32> to vector<1xf32>
    %225 = vector.shape_cast %224 : vector<1xf32> to vector<1x1xf32>
    %c0_145 = arith.constant 0 : index
    %c0_146 = arith.constant 0 : index
    %c0_147 = arith.constant 0 : index
    %c0_148 = arith.constant 0 : index
    %226 = vector.load %arg12[%c0_145, %c0_146, %c0_147, %c0_148] : memref<1x1x1x1xf32, #tpu.memory_space<vmem>>, vector<1x1x1x1xf32>
    %227 = vector.shape_cast %226 : vector<1x1x1x1xf32> to vector<1x1xf32>
    %cst_149 = arith.constant dense<0.000000e+00> : vector<1xf32>
    %228 = vector.multi_reduction <add>, %227, %cst_149 [1] : vector<1x1xf32> to vector<1xf32>
    %229 = vector.shape_cast %228 : vector<1xf32> to vector<1x1xf32>
    %cst_150 = arith.constant 0.000000e+00 : f32
    %230 = vector.broadcast %cst_150 : f32 to vector<1x1xf32>
    %231 = arith.subf %230, %222 : vector<1x1xf32>
    %cst_151 = arith.constant 2.000000e+00 : f32
    %232 = vector.broadcast %cst_151 : f32 to vector<1x1xf32>
    %233 = arith.mulf %232, %225 : vector<1x1xf32>
    %234 = arith.addf %231, %233 : vector<1x1xf32>
    %235 = arith.subf %234, %229 : vector<1x1xf32>
    %cst_152 = arith.constant 5.000000e-01 : f32
    %236 = vector.broadcast %cst_152 : f32 to vector<1x1xf32>
    %237 = arith.mulf %235, %236 : vector<1x1xf32>
    %238 = tpu.iota {dimensions = array<i32: 1>} : vector<1x128xi32>
    %c0_i32 = arith.constant 0 : i32
    %239 = vector.broadcast %c0_i32 : i32 to vector<1x128xi32>
    %240 = arith.cmpi eq, %238, %239 : vector<1x128xi32>
    %cst_153 = arith.constant 0.000000e+00 : f32
    %241 = vector.shape_cast %237 : vector<1x1xf32> to vector<1x1xf32>
    %242 = vector.broadcast %241 : vector<1x1xf32> to vector<1x128xf32>
    %243 = vector.broadcast %cst_153 : f32 to vector<1x128xf32>
    %244 = arith.select %240, %242, %243 : vector<1x128xi1>, vector<1x128xf32>
    %245 = arith.subf %213, %211 : vector<1x256xf32>
    %246 = arith.mulf %245, %245 : vector<1x256xf32>
    %cst_154 = arith.constant dense<0.000000e+00> : vector<1xf32>
    %247 = vector.multi_reduction <add>, %246, %cst_154 [1] : vector<1x256xf32> to vector<1xf32>
    %248 = vector.shape_cast %247 : vector<1xf32> to vector<1x1xf32>
    %cst_155 = arith.constant 0.001953125 : f32
    %249 = vector.broadcast %cst_155 : f32 to vector<1x1xf32>
    %250 = arith.mulf %248, %249 : vector<1x1xf32>
    %c1_i32 = arith.constant 1 : i32
    %251 = vector.broadcast %c1_i32 : i32 to vector<1x128xi32>
    %252 = arith.cmpi eq, %238, %251 : vector<1x128xi32>
    %253 = vector.shape_cast %250 : vector<1x1xf32> to vector<1x1xf32>
    %254 = vector.broadcast %253 : vector<1x1xf32> to vector<1x128xf32>
    %255 = arith.select %252, %254, %244 : vector<1x128xi1>, vector<1x128xf32>
    %c0_156 = arith.constant 0 : index
    %c0_157 = arith.constant 0 : index
    %c0_158 = arith.constant 0 : index
    %c0_159 = arith.constant 0 : index
    %256 = vector.load %arg15[%c0_156, %c0_157, %c0_158, %c0_159] : memref<1x1x1x128xf32, #tpu.memory_space<vmem>>, vector<1x1x1x128xf32>
    %257 = vector.shape_cast %256 : vector<1x1x1x128xf32> to vector<1x128xf32>
    %258 = vector.shape_cast %255 : vector<1x128xf32> to vector<1x1x1x128xf32>
    tpu.vector_store %arg15[%c0_156, %c0_157, %c0_158, %c0_159], %258 {strides = array<i32>} : memref<1x1x1x128xf32, #tpu.memory_space<vmem>>, vector<1x1x1x128xf32>,
    return
  }
  func.func @transform_0(%arg0: i32, %arg1: i32) -> (i32, i32, i32, i32) {
    %c0_i32 = arith.constant 0 : i32
    %c0_i32_0 = arith.constant 0 : i32
    %c0_i32_1 = arith.constant 0 : i32
    return %arg0, %arg1, %c0_i32, %c0_i32_0 : i32, i32, i32, i32
  }
  func.func @transform_1(%arg0: i32, %arg1: i32) -> (i32, i32) {
    %c0_i32 = arith.constant 0 : i32
    %c0_i32_0 = arith.constant 0 : i32
    %c0_i32_1 = arith.constant 0 : i32
    return %c0_i32, %c0_i32_0 : i32, i32
  }
  func.func @transform_2(%arg0: i32, %arg1: i32) -> (i32, i32) {
    %c0_i32 = arith.constant 0 : i32
    %c0_i32_0 = arith.constant 0 : i32
    %c0_i32_1 = arith.constant 0 : i32
    return %c0_i32, %c0_i32_0 : i32, i32
  }
  func.func @transform_3(%arg0: i32, %arg1: i32) -> (i32, i32, i32) {
    %c0_i32 = arith.constant 0 : i32
    %c0_i32_0 = arith.constant 0 : i32
    %c0_i32_1 = arith.constant 0 : i32
    %c0_i32_2 = arith.constant 0 : i32
    return %c0_i32, %c0_i32_0, %c0_i32_1 : i32, i32, i32
  }
  func.func @transform_4(%arg0: i32, %arg1: i32) -> (i32, i32) {
    %c0_i32 = arith.constant 0 : i32
    %c0_i32_0 = arith.constant 0 : i32
    %c0_i32_1 = arith.constant 0 : i32
    return %c0_i32, %c0_i32_0 : i32, i32
  }
  func.func @transform_5(%arg0: i32, %arg1: i32) -> (i32, i32, i32) {
    %c0_i32 = arith.constant 0 : i32
    %c0_i32_0 = arith.constant 0 : i32
    %c0_i32_1 = arith.constant 0 : i32
    %c0_i32_2 = arith.constant 0 : i32
    return %c0_i32, %c0_i32_0, %c0_i32_1 : i32, i32, i32
  }
  func.func @transform_6(%arg0: i32, %arg1: i32) -> (i32, i32) {
    %c0_i32 = arith.constant 0 : i32
    %c0_i32_0 = arith.constant 0 : i32
    %c0_i32_1 = arith.constant 0 : i32
    return %c0_i32, %c0_i32_0 : i32, i32
  }
  func.func @transform_7(%arg0: i32, %arg1: i32) -> (i32, i32, i32) {
    %c0_i32 = arith.constant 0 : i32
    %c0_i32_0 = arith.constant 0 : i32
    %c0_i32_1 = arith.constant 0 : i32
    %c0_i32_2 = arith.constant 0 : i32
    return %c0_i32, %c0_i32_0, %c0_i32_1 : i32, i32, i32
  }
  func.func @transform_8(%arg0: i32, %arg1: i32) -> (i32, i32, i32) {
    %c0_i32 = arith.constant 0 : i32
    %c0_i32_0 = arith.constant 0 : i32
    %c0_i32_1 = arith.constant 0 : i32
    return %arg0, %c0_i32, %c0_i32_0 : i32, i32, i32
  }
  func.func @transform_9(%arg0: i32, %arg1: i32) -> (i32, i32, i32) {
    %c0_i32 = arith.constant 0 : i32
    %c0_i32_0 = arith.constant 0 : i32
    %c0_i32_1 = arith.constant 0 : i32
    return %arg0, %c0_i32, %c0_i32_0 : i32, i32, i32
  }
  func.func @transform_10(%arg0: i32, %arg1: i32) -> (i32, i32, i32, i32) {
    %c0_i32 = arith.constant 0 : i32
    %c0_i32_0 = arith.constant 0 : i32
    %c0_i32_1 = arith.constant 0 : i32
    return %arg0, %arg1, %c0_i32, %c0_i32_0 : i32, i32, i32, i32
  }
  func.func @transform_11(%arg0: i32, %arg1: i32) -> (i32, i32, i32, i32) {
    %c0_i32 = arith.constant 0 : i32
    %c0_i32_0 = arith.constant 0 : i32
    %c0_i32_1 = arith.constant 0 : i32
    return %arg0, %arg1, %c0_i32, %c0_i32_0 : i32, i32, i32, i32
  }
  func.func @transform_12(%arg0: i32, %arg1: i32) -> (i32, i32, i32, i32) {
    %c0_i32 = arith.constant 0 : i32
    %c0_i32_0 = arith.constant 0 : i32
    %c0_i32_1 = arith.constant 0 : i32
    return %arg0, %arg1, %c0_i32, %c0_i32_0 : i32, i32, i32, i32
  }
  func.func @transform_13(%arg0: i32, %arg1: i32) -> (i32, i32, i32, i32) {
    %c0_i32 = arith.constant 0 : i32
    %c0_i32_0 = arith.constant 0 : i32
    %c0_i32_1 = arith.constant 0 : i32
    return %arg0, %arg1, %c0_i32, %c0_i32_0 : i32, i32, i32, i32
  }
}

</mosaic_0001>

<bundles_post_ra>
// kernel: _forward.1
= control target key start
LH: loop header
LB: loop body
LE: loop exit
PB: predicated region body
PF: predicated region fallthrough
CT: control target
= control target key end

     0   :  { %s3877_s25 = smov 0   ;;  %s3879_s26 = smov 0   ;;  %s4629_s0 = inlined_call_operand.vmem [shape: bf16[3,2,36,256], index: 0, kind: input, shape index: {}]   ;;  %s4630_s1 = inlined_call_operand.vmem [shape: bf16[32,36], index: 1, kind: input, shape index: {}]   ;;  %s4631_s2 = inlined_call_operand.vmem [shape: f32[32,1], index: 2, kind: input, shape index: {}]   ;;  %s4632_s3 = inlined_call_operand.vmem [shape: bf16[9,32,32], index: 3, kind: input, shape index: {}]   ;;  %s4633_s4 = inlined_call_operand.vmem [shape: f32[32,1], index: 4, kind: input, shape index: {}]   ;;  %s4634_s5 = inlined_call_operand.vmem [shape: bf16[9,32,32], index: 5, kind: input, shape index: {}]   ;;  %s4635_s6 = inlined_call_operand.vmem [shape: f32[32,1], index: 6, kind: input, shape index: {}]   ;;  %s4636_s7 = inlined_call_operand.vmem [shape: bf16[9,1,256], index: 7, kind: input, shape index: {}]   ;;  %s4637_s8 = inlined_call_operand.vmem [shape: f32[3,8,32], index: 8, kind: input, shape index: {}]   ;;  %s4638_s9 = inlined_call_operand.vmem [shape: f32[3,1,1], index: 9, kind: input, shape index: {}]   ;;  %s4639_s10 = inlined_call_operand.vmem [shape: f32[3,2,1,1], index: 10, kind: input, shape index: {}]   ;;  %s4640_s11 = inlined_call_operand.vmem [shape: f32[3,2,1,256], index: 11, kind: input, shape index: {}]   ;;  %s4641_s12 = inlined_call_operand.vmem [shape: f32[3,2,1,256], index: 12, kind: input, shape index: {}]   ;;  %s4642_s13 = inlined_call_operand.vmem [shape: f32[3,2,1,128], index: 13, kind: output, shape index: {}]  }
   0x1   :  { %4651 = sst [smem:[#allocation4_spill]] %s4629_s0  ;;  %s3881_s27 = smov 0  }
   0x2   :  { %s3883_s28 = smov 0   ;;  %s3885_s29 = smov 0  }
   0x3 LB: > { %s32_s30 = sadd.s32 1, %s3786_s27  ;;  %s35_s14 = sadd.s32 1, %s3790_s28  ;;  %s3794_s29 = sphi %s3885_s29, %s23_s29   ;;  %s3790_s28 = sphi %s3883_s28, %s4664_s28   ;;  %s3786_s27 = sphi %s3881_s27, %s4663_s27   ;;  %s3782_s26 = sphi %s3879_s26, %s4662_s26   ;;  %s3778_s25 = sphi %s3877_s25, %s4661_s25  }
   0x4   : > { %p33_p0 = scmp.ge.s32.totalorder %s32_s30, 2  ;;  %p3341_p1 = scmp.ge.s32.totalorder %s3794_s29, 1 }
   0x5   : > { %p468_p2 = scmp.lt.s32.totalorder %s3794_s29, 7 }
   0x6   : > { %s4666_s30 = smov (%p33_p0, %s32_s30), 0  ;;  %s4668_s14 = smov (!%p33_p0, %s35_s14), %s3790_s28 }
   0x7   : > { %4652 = sst [smem:[#allocation2_spill]] %s4666_s30  ;;  %p469_p3 = pnand %p3341_p1, %p468_p2 }
   0x8   : > { %p37_p4 = scmp.ge.s32.totalorder %s4668_s14, 3  ;;  %p548_p5 = scmp.lt.s32.totalorder (!%p469_p3), %s3782_s26, 2  ;;  %v3796_v0 = vmov (!%p469_p3), 0   ;;  %v604_v1 = vld [vmem:[%s4631_s2] sm:$0xff] (!%p469_p3)  ;;  %v606_v2 = vld [vmem:[%s4631_s2 + $0x10] sm:$0xff] (!%p469_p3)  ;;  %v605_v3 = vld [vmem:[%s4631_s2 + $0x8] sm:$0xff] (!%p469_p3)  ;;  %v781_v53 = vlaneseq (!%p469_p3) }
   0x9   : > { %472 = sbr.rel (%p469_p3) target bundleno = 1732 (0x6c4), region = 72  ;;  %p550_p6 = scmp.lt.s32.totalorder (!%p469_p3), %s3778_s25, 1  ;;  %709 = vmatprep.mubr.bf16.mxu0 (!%p469_p3), %v3796_v0  ;;  %3708 = vset.pattern.permute.xlu0 (!%p469_p3), %v3796_v0  ;;  %v607_v4 = vld [vmem:[%s4631_s2 + $0x18] sm:$0xff] (!%p469_p3)  ;;  %vm670_vm0 = vcmask (!%p469_p3), 1041408   ;;  %vm663_vm1 = vcmask (!%p469_p3), 293888   ;;  %v3718_v13 = vld [vmem:[%s4630_s1] sm:$0xff] (!%p469_p3)  }
   0xa   : > { %s4670_s14 = smov (%p37_p4, %s4668_s14), 0  ;;  %3709 = vset.pattern.permute.xlu1 (!%p469_p3), %v3796_v0  ;;  %933 = vmatprep.mubr.bf16.mxu1 (!%p469_p3), %v3796_v0  ;;  %s4654_s0 = sld [smem:[#allocation4_spill]] (!%p469_p3)  ;;  %v3719_v14 = vld [vmem:[%s4630_s1 + $0x8] sm:$0xff] (!%p469_p3)   ;;  %v1987_v48 = vld [vmem:[%s4633_s4] sm:$0xff] (!%p469_p3)  ;;  %v1990_v49 = vld [vmem:[%s4633_s4 + $0x18] sm:$0xff] (!%p469_p3)  ;;  %v4065_v55 = vshrl.u32 (!%p469_p3), %v781_v53, 7 }
   0xb   : > { %4653 = sst [smem:[#allocation3_spill]] %s4670_s14  ;;  %610 = vperm.xlu0 (!%p469_p3), %3708, %v604_v1   ;;  %620 = vperm.xlu1 (!%p469_p3), %3709, %v606_v2   ;;  %s3797_s20 = smov (!%p469_p3), 16   ;;  %v1988_v47 = vld [vmem:[%s4633_s4 + $0x8] sm:$0xff] (!%p469_p3)  ;;  %v1989_v50 = vld [vmem:[%s4633_s4 + $0x10] sm:$0xff] (!%p469_p3)  ;;  %v3805_v51 = vmov (!%p469_p3), 1966171168  }
   0xc   : > { %s3798_s21 = smov (!%p469_p3), 17   ;;  %s4649_s23 = smov (!%p469_p3), 1   ;;  %v779_v52 = vunpack.c.l.s4 (!%p469_p3), %v3805_v51  ;;  %v3363_v56 = vld.sshfl [vmem:[%s4636_s7 + $0x2] sm:$0x11 pattern:$0x75316420] (!%p469_p3) }
   0xd   : > { %s4647_s24 = smov (!%p469_p3), 127   ;;  %v846_v58 = vcombine.high (!%p469_p3), %v3363_v56, %v3363_v56  ;;  %v4076_v61 = vsub.s32 (!%p469_p3), 0, %v4065_v55  ;;  %v3361_v1 = vld.sshfl [vmem:[%s4636_s7] sm:$0x11 pattern:$0x75316420] (!%p469_p3) }
   0xe   : > { %v780_v54 = vunpack.c.0.s8 (!%p469_p3), %v779_v52  ;;  %vm822_vm2 = vcmask (!%p469_p3), 130048   ;;  %vm754_vm3 = vcmask (!%p469_p3), 138240   ;;  %vm894_vm4 = vcmask (!%p469_p3), 261120  }
   0xf   : > { %615 = vperm.xlu0 (!%p469_p3), %3708, %v605_v3   ;;  %625 = vperm.xlu1 (!%p469_p3), %3709, %v607_v4   ;;  %v777_v4 = vcombine.high (!%p469_p3), %v3361_v1, %v3361_v1  ;;  %vm1031_vm5 = vcmask (!%p469_p3), 121856   ;;  %vm1178_vm6 = vcmask (!%p469_p3), 7168   ;;  %vm1407_vm7 = vcmask (!%p469_p3), 1039360  }
  0x10   : > { %s4672_s26 = smov (!%p548_p5, %s3782_s26), 2  ;;  %s4674_s25 = smov (!%p550_p6, %s3778_s25), 1  ;;  %v4071_v57 = vsub.s32 %v780_v54, %v4065_v55  ;;  %vm1554_vm8 = vcmask 924672   ;;  %vm1701_vm9 = vcmask 916480   ;;  %vm1848_vm10 = vcmask 908288  }
  0x11   : > { %s3656_s19 = smul.u32 20, %s4672_s26  ;;  %s3345_s18 = sshll.u32 %s4674_s25, 1  ;;  %vm3102_vm11 = vcmask 1040384  }
  0x12   : > { %s3655_s22 = smul.u32 10, %s4674_s25  ;;  %v860_v59 = vrot.slane %v846_v58, %v4071_v57  ;;  %v853_v60 = vrot.slane %v3363_v56, %v4071_v57 }
  0x14   : > { %s554_s15 = sadd.s32 %s3656_s19, %s3655_s22  ;;  %s3799_s22 = smov 15   ;;  %v869_v62 = vpack.i.b16 %v860_v59, %v860_v59  ;;  %v862_v63 = vpack.i.b16 %v853_v60, %v853_v60 }
  0x15   : > { %s3342_s16 = sshll.u32 %s554_s15, 2  ;;  %s4645_s15 = smov 113  }
  0x16   : > { %s556_s17 = scalar_lea.vmem %s4654_s0, %s3342_s16  ;;  %s4643_s16 = smov 112   ;;  %v4082_v2 = vrot.slane %v869_v62, %v4076_v61  ;;  %v4085_v3 = vrot.slane %v862_v63, %v4076_v61  ;;  %v3387_v62 = vld.sshfl [vmem:[%s4636_s7 + $0x6] sm:$0x11 pattern:$0x75316420] }
  0x17   : > { %v3710_v5 = vld [vmem:[%s556_s17 + $0x4] ss:$8 sps:$4 sm:$0xff]   ;;  %v3712_v6 = vld [vmem:[%s556_s17] ss:$8 sps:$4 sm:$0xff]   ;;  %v3713_v7 = vld [vmem:[%s556_s17 + $0x14] ss:$8 sps:$4 sm:$0xff]  }
  0x18   : > { %677 = vmatprep.subr.bf16.mxu0 %v3710_v5  ;;  %v3715_v8 = vld [vmem:[%s556_s17 + $0x10] ss:$8 sps:$4 sm:$0xff]   ;;  %v603_v9 = vld [vmem:[%s556_s17 + $0x20] sm:$0x33]  ;;  %s3804_s17 = smov 111   ;;  %s3346_s19 = sshll.u32 %s4672_s26, 2 }
  0x19   : > { %678 = vmatpush1.bf16.msra.mxu0 %v3712_v6  ;;  %v3356_v10 = vcombine.low %v603_v9, %v603_v9  ;;  %v3357_v11 = vcombine.high %v603_v9, %v603_v9  ;;  %v784_v9 = vrot.slane %v3361_v1, %v4071_v57 }
  0x1a   : > { %679 = vmatprep.subr.bf16.mxu0 %v3713_v7 }
  0x1b   : > { %v672_v12 = vsel %vm670_vm0, %v3356_v10, 0 }
  0x1d   : > { %680 = vmatpush1.bf16.msra.mxu0 %v3715_v8 }
  0x1e   : > { %3358 = vmatprep.subr.msk.bf16.mxu0 %vm670_vm0, %v3357_v11 }
  0x21   : > { %682 = vmatpush1.bf16.msra.mxu0 %v672_v12  ;;  %v791_v12 = vrot.slane %v777_v4, %v4071_v57 }
  0x24   : > { %3359 = vmatmul.mubr.msk.bf16.vlgmr.msra.gmra.mrb[0].mxu0 %vm663_vm1, %v3718_v13  ;;  %v3377_v13 = vld.sshfl [vmem:[%s4636_s7 + $0x4] sm:$0x11 pattern:$0x75316420] }
  0x25   : > { %719 = vmatprep.mubr.bf16.mxu0 %v3796_v0 }
  0x2c   : > { %3360 = vmatmul.mubr.msk.bf16.gmra.mrb[4].mxu0 %vm663_vm1, %v3719_v14  ;;  %v793_v14 = vpack.i.b16 %v784_v9, %v784_v9  ;;  %v1202_v9 = vcombine.high %v3387_v62, %v3387_v62 }
  0x2d   : > { %2140 = vmatprep.mubr.bf16.mxu0 %v3796_v0 }
  0x8a   : > { %v611_v15 = vpop.permute.xlu0 %610  ;;  %v621_v24 = vpop.permute.xlu1 %620 }
  0x8e   : > { %v616_v17 = vpop.permute.xlu0 %615  ;;  %v626_v35 = vpop.permute.xlu1 %625 }
  0xf7   : > { %v711_v16 = vpop.f32.mrb[0].mxu0 }
  0xf8   : > { %v3940_v18 = vadd.f32 %v711_v16, %v611_v15  ;;  %v713_v19 = vpop.f32.mrb[1].mxu0  ;;  %v1055_v16 = vcombine.high %v3377_v13, %v3377_v13 }
  0xf9   : > { %v3942_v20 = vadd.f32 %v713_v19, %v611_v15  ;;  %v715_v21 = vpop.f32.mrb[2].mxu0  ;;  %v800_v15 = vpack.i.b16 %v791_v12, %v791_v12 }
  0xfa   : > { %v3944_v22 = vadd.f32 %v715_v21, %v616_v17  ;;  %v717_v23 = vpop.f32.mrb[3].mxu0  ;;  %v730_v26 = vmax.f32 %v3940_v18, 0.0 }
  0xfb   : > { %v3946_v25 = vadd.f32 %v717_v23, %v616_v17  ;;  %v731_v28 = vmax.f32 %v3942_v20, 0.0 }
  0xfc   : > { %v732_v27 = vmax.f32 %v3944_v22, 0.0 }
  0xfd   : > { %v733_v29 = vmax.f32 %v3946_v25, 0.0 }
  0xfe   : > { %v3956_v30 = vpack.c.bf16 %v732_v27, %v730_v26 }
  0xff   : > { %v3962_v31 = vpack.c.bf16 %v733_v29, %v731_v28  ;;  %v721_v32 = vpop.f32.mrb[4].mxu0 }
 0x100   : > { %v3964_v33 = vadd.f32 %v721_v32, %v621_v24  ;;  %v723_v34 = vpop.f32.mrb[5].mxu0  ;;  %818 = vrot.lane.b32.xlu1 %v3956_v30, %s3797_s20 }
 0x101   : > { %v3968_v36 = vadd.f32 %v723_v34, %v621_v24  ;;  %v725_v37 = vpop.f32.mrb[6].mxu0  ;;  %814 = vrot.lane.b32.xlu0 %v3962_v31, %s3797_s20  ;;  %v4099_v24 = vrot.slane %v793_v14, %v4076_v61 }
 0x102   : > { %v3972_v38 = vadd.f32 %v725_v37, %v626_v35  ;;  %v727_v39 = vpop.f32.mrb[7].mxu0  ;;  %v734_v41 = vmax.f32 %v3964_v33, 0.0  ;;  %v1069_v37 = vrot.slane %v1055_v16, %v4071_v57 }
 0x103   : > { %v3974_v40 = vadd.f32 %v727_v39, %v626_v35  ;;  %v735_v43 = vmax.f32 %v3968_v36, 0.0  ;;  %v4104_v35 = vrot.slane %v800_v15, %v4076_v61 }
 0x104   : > { %v736_v42 = vmax.f32 %v3972_v38, 0.0  ;;  %v1078_v54 = vpack.i.b16 %v1069_v37, %v1069_v37 }
 0x105   : > { %v737_v44 = vmax.f32 %v3974_v40, 0.0 }
 0x106   : > { %v3984_v45 = vpack.c.bf16 %v736_v42, %v734_v41  ;;  %v4124_v4 = vrot.slane %v1078_v54, %v4076_v61  ;;  %v3723_v54 = vld [vmem:[%s4632_s3 + $0x8] sm:$0xff]  }
 0x107   : > { %v3990_v46 = vpack.c.bf16 %v737_v44, %v735_v43 }
 0x108   : > { %820 = vrot.lane.b32.xlu1 %v3984_v45, %s3797_s20 }
 0x109   : > { %816 = vrot.lane.b32.xlu0 %v3990_v46, %s3797_s20 }
 0x10c   : > { %750 = vrot.lane.b32.xlu1 %v3956_v30, %s3798_s21 }
 0x10d   : > { %744 = vrot.lane.b32.xlu0 %v3962_v31, %s3798_s21 }
 0x110   : > { %752 = vrot.lane.b32.xlu1 %v3984_v45, %s3798_s21 }
 0x111   : > { %746 = vrot.lane.b32.xlu0 %v3990_v46, %s3798_s21 }
 0x114   : > { %1027 = vrot.lane.b32.xlu1 %v3956_v30, %s3799_s22 }
 0x115   : > { %1023 = vrot.lane.b32.xlu0 %v3962_v31, %s3799_s22 }
 0x118   : > { %1029 = vrot.lane.b32.xlu1 %v3984_v45, %s3799_s22 }
 0x119   : > { %1025 = vrot.lane.b32.xlu0 %v3990_v46, %s3799_s22 }
 0x11c   : > { %1174 = vrot.lane.b32.xlu1 %v3956_v30, %s4649_s23 }
 0x11d   : > { %1170 = vrot.lane.b32.xlu0 %v3962_v31, %s4649_s23 }
 0x120   : > { %1176 = vrot.lane.b32.xlu1 %v3984_v45, %s4649_s23 }
 0x121   : > { %1172 = vrot.lane.b32.xlu0 %v3990_v46, %s4649_s23  ;;  %s577_s23 = sadd.s32 %s3346_s19, %s3345_s18 }
 0x122   : > { %s578_s0 = scalar_lea.vmem %s4640_s11, %s577_s23 }
 0x124   : > { %1401 = vrot.lane.b32.xlu1 %v3962_v31, %s4647_s24 }
 0x125   : > { %1399 = vrot.lane.b32.xlu0 %v3956_v30, %s4647_s24 }
 0x128   : > { %1405 = vrot.lane.b32.xlu1 %v3990_v46, %s4647_s24 }
 0x129   : > { %1403 = vrot.lane.b32.xlu0 %v3984_v45, %s4647_s24 }
 0x12c   : > { %1548 = vrot.lane.b32.xlu1 %v3962_v31, %s4645_s15 }
 0x12d   : > { %1546 = vrot.lane.b32.xlu0 %v3956_v30, %s4645_s15 }
 0x130   : > { %1552 = vrot.lane.b32.xlu1 %v3990_v46, %s4645_s15 }
 0x131   : > { %1550 = vrot.lane.b32.xlu0 %v3984_v45, %s4645_s15  ;;  %s4658_s15 = smov 112  }
 0x134   : > { %1695 = vrot.lane.b32.xlu1 %v3962_v31, %s4643_s16 }
 0x135   : > { %1693 = vrot.lane.b32.xlu0 %v3956_v30, %s4643_s16 }
 0x138   : > { %1699 = vrot.lane.b32.xlu1 %v3990_v46, %s4643_s16 }
 0x139   : > { %1697 = vrot.lane.b32.xlu0 %v3984_v45, %s4643_s16 }
 0x13c   : > { %1842 = vrot.lane.b32.xlu1 %v3962_v31, %s3804_s17 }
 0x13d   : > { %1840 = vrot.lane.b32.xlu0 %v3956_v30, %s3804_s17 }
 0x140   : > { %1846 = vrot.lane.b32.xlu1 %v3990_v46, %s3804_s17 }
 0x141   : > { %1844 = vrot.lane.b32.xlu0 %v3984_v45, %s3804_s17 }
 0x144   : > { %1998 = vperm.xlu1 %3709, %v1988_v47  }
 0x145   : > { %1993 = vperm.xlu0 %3708, %v1987_v48   ;;  %v3720_v48 = vld [vmem:[%s4632_s3 + $0x10] sm:$0xff]  }
 0x148   : > { %2008 = vperm.xlu1 %3709, %v1990_v49  }
 0x149   : > { %2003 = vperm.xlu0 %3708, %v1989_v50  }
 0x172   : > { %v819_v5 = vpop.permute.xlu1 %818 }
 0x173   : > { %v815_v6 = vpop.permute.xlu0 %814 }
 0x174   : > { %v830_v7 = vsel %vm822_vm2, %v815_v6, %v819_v5  ;;  %v823_v8 = vsel %vm822_vm2, %v819_v5, %v815_v6  ;;  %v1062_v6 = vrot.slane %v3377_v13, %v4071_v57  ;;  %v1216_v13 = vrot.slane %v1202_v9, %v4071_v57 }
 0x175   : > { %v876_v10 = vmul.bf16 %v4082_v2, %v823_v8  ;;  %v875_v11 = vmul.bf16 %v4085_v3, %v830_v7  ;;  %v3721_v8 = vld [vmem:[%s4632_s3 + $0x18] sm:$0xff]  }
 0x176   : > { %v1071_v12 = vpack.i.b16 %v1062_v6, %v1062_v6 }
 0x177   : > { %901 = vmatprep.subr.bf16.mxu1 %v876_v10 }
 0x178   : > { %902 = vmatpush1.bf16.msra.mxu1 %v875_v11  ;;  %v4136_v16 = vrot.slane %v1071_v12, %v4076_v61 }
 0x17a   : > { %v821_v17 = vpop.permute.xlu1 %820 }
 0x17b   : > { %v817_v19 = vpop.permute.xlu0 %816 }
 0x17c   : > { %v824_v21 = vsel %vm822_vm2, %v821_v17, %v817_v19  ;;  %v834_v23 = vsel %vm822_vm2, %v817_v19, %v821_v17  ;;  %v1225_v19 = vpack.i.b16 %v1216_v13, %v1216_v13 }
 0x17d   : > { %v877_v32 = vmul.bf16 %v4085_v3, %v834_v23  ;;  %v878_v34 = vmul.bf16 %v4082_v2, %v824_v21  ;;  %v3722_v21 = vld [vmem:[%s4632_s3] sm:$0xff]  }
 0x17e   : > { %v751_v39 = vpop.permute.xlu1 %750 }
 0x17f   : > { %v745_v47 = vpop.permute.xlu0 %744  ;;  %903 = vmatprep.subr.bf16.mxu1 %v878_v34 }
 0x180   : > { %v755_v49 = vsel %vm754_vm3, %v751_v39, %v745_v47  ;;  %v762_v50 = vsel %vm754_vm3, %v745_v47, %v751_v39  ;;  %904 = vmatpush1.bf16.msra.mxu1 %v877_v32 }
 0x181   : > { %v806_v51 = vmul.bf16 %v4099_v24, %v762_v50  ;;  %v807_v52 = vmul.bf16 %v4104_v35, %v755_v49 }
 0x182   : > { %v753_v56 = vpop.permute.xlu1 %752 }
 0x183   : > { %v747_v58 = vpop.permute.xlu0 %746  ;;  %3370 = vmatmul.mubr.msk.bf16.vlgmr.msra.gmra.mrb[0].mxu1 %vm894_vm4, %v3720_v48  ;;  %970 = vmatprep.subr.bf16.mxu1 %v807_v52  ;;  %v4147_v48 = vrot.slane %v1225_v19, %v4076_v61 }
 0x184   : > { %v756_v59 = vsel %vm754_vm3, %v753_v56, %v747_v58  ;;  %v766_v60 = vsel %vm754_vm3, %v747_v58, %v753_v56  ;;  %971 = vmatpush1.bf16.msra.mxu1 %v806_v51  ;;  %943 = vmatprep.mubr.bf16.mxu1 %v3796_v0  ;;  %v1209_v51 = vrot.slane %v3387_v62, %v4071_v57 }
 0x185   : > { %v808_v63 = vmul.bf16 %v4099_v24, %v766_v60  ;;  %v809_v1 = vmul.bf16 %v4104_v35, %v756_v59 }
 0x186   : > { %v1028_v5 = vpop.permute.xlu1 %1027  ;;  %v1218_v56 = vpack.i.b16 %v1209_v51, %v1209_v51 }
 0x187   : > { %v1024_v7 = vpop.permute.xlu0 %1023  ;;  %972 = vmatprep.subr.bf16.mxu1 %v809_v1 }
 0x188   : > { %v1032_v10 = vsel %vm1031_vm5, %v1028_v5, %v1024_v7  ;;  %973 = vmatpush1.bf16.msra.mxu1 %v808_v63  ;;  %v1039_v17 = vsel %vm1031_vm5, %v1024_v7, %v1028_v5  ;;  %v4161_v60 = vrot.slane %v1218_v56, %v4076_v61  ;;  %v3724_v63 = vld [vmem:[%s4632_s3 + $0x20] sm:$0xff]  }
 0x189   : > { %v1085_v11 = vmul.bf16 %v4124_v4, %v1032_v10  ;;  %v1084_v37 = vmul.bf16 %v4136_v16, %v1039_v17 }
 0x18a   : > { %v1030_v14 = vpop.permute.xlu1 %1029 }
 0x18b   : > { %v1026_v15 = vpop.permute.xlu0 %1025  ;;  %3371 = vmatmul.mubr.msk.bf16.gmra.mrb[4].mxu1 %vm894_vm4, %v3721_v8  ;;  %1109 = vmatprep.subr.bf16.mxu1 %v1085_v11  ;;  %v3405_v8 = vld.sshfl [vmem:[%s4636_s7 + $0xa] sm:$0x11 pattern:$0x75316420] }
 0x18c   : > { %1002 = vmatprep.mubr.bf16.mxu1 %v3796_v0  ;;  %v1033_v23 = vsel %vm1031_vm5, %v1030_v14, %v1026_v15  ;;  %v1043_v39 = vsel %vm1031_vm5, %v1026_v15, %v1030_v14  ;;  %v1431_v10 = vcombine.high %v3405_v8, %v3405_v8  ;;  %v3725_v11 = vld [vmem:[%s4632_s3 + $0x28] sm:$0xff]   ;;  %v3726_v15 = vld [vmem:[%s4632_s3 + $0x30] sm:$0xff]  }
 0x18d   : > { %v1087_v47 = vmul.bf16 %v4124_v4, %v1033_v23  ;;  %v1086_v50 = vmul.bf16 %v4136_v16, %v1043_v39  ;;  %v1438_v23 = vrot.slane %v3405_v8, %v4071_v57 }
 0x18e   : > { %v1175_v32 = vpop.permute.xlu1 %1174  ;;  %v1445_v12 = vrot.slane %v1431_v10, %v4071_v57  ;;  %v3729_v10 = vld [vmem:[%s4632_s3 + $0x48] sm:$0xff]  }
 0x18f   : > { %v1171_v34 = vpop.permute.xlu0 %1170  ;;  %v1447_v39 = vpack.i.b16 %v1438_v23, %v1438_v23 }
 0x190   : > { %v1179_v49 = vsel %vm1178_vm6, %v1175_v32, %v1171_v34  ;;  %v1186_v62 = vsel %vm1178_vm6, %v1171_v34, %v1175_v32  ;;  %v1454_v14 = vpack.i.b16 %v1445_v12, %v1445_v12 }
 0x191   : > { %v1232_v52 = vmul.bf16 %v4147_v48, %v1179_v49  ;;  %v1231_v5 = vmul.bf16 %v4161_v60, %v1186_v62 }
 0x192   : > { %v1177_v58 = vpop.permute.xlu1 %1176  ;;  %v4188_v19 = vrot.slane %v1454_v14, %v4076_v61 }
 0x193   : > { %3374 = vmatmul.mubr.msk.bf16.vlgmr.msra.gmra.mrb[0].mxu1 %vm894_vm4, %v3722_v21  ;;  %v1173_v59 = vpop.permute.xlu0 %1172  ;;  %v3415_v21 = vld.sshfl [vmem:[%s4636_s7 + $0xc] sm:$0x11 pattern:$0x75316420] }
 0x194   : > { %1110 = vmatpush1.bf16.msra.mxu1 %v1084_v37  ;;  %1012 = vmatprep.mubr.bf16.mxu1 %v3796_v0  ;;  %v1180_v1 = vsel %vm1178_vm6, %v1177_v58, %v1173_v59  ;;  %v1190_v6 = vsel %vm1178_vm6, %v1173_v59, %v1177_v58  ;;  %v1578_v34 = vcombine.high %v3415_v21, %v3415_v21  ;;  %v3727_v37 = vld [vmem:[%s4632_s3 + $0x38] sm:$0xff]  }
 0x195   : > { %1111 = vmatprep.subr.bf16.mxu1 %v1087_v47  ;;  %v1234_v7 = vmul.bf16 %v4147_v48, %v1180_v1  ;;  %v1233_v9 = vmul.bf16 %v4161_v60, %v1190_v6 }
 0x196   : > { %v1402_v13 = vpop.permute.xlu1 %1401 }
 0x197   : > { %v1400_v17 = vpop.permute.xlu0 %1399 }
 0x198   : > { %1112 = vmatpush1.bf16.msra.mxu1 %v1086_v50  ;;  %v1408_v50 = vsel %vm1407_vm7, %v1400_v17, %v1402_v13 }
 0x199   : > { %1256 = vmatprep.subr.bf16.mxu1 %v1232_v52 }
 0x19a   : > { %v1406_v47 = vpop.permute.xlu1 %1405 }
 0x19b   : > { %3375 = vmatmul.mubr.msk.bf16.gmra.mrb[4].mxu1 %vm894_vm4, %v3723_v54  ;;  %v1404_v49 = vpop.permute.xlu0 %1403 }
 0x19c   : > { %1141 = vmatprep.mubr.bf16.mxu1 %v3796_v0  ;;  %v1419_v52 = vsel %vm1407_vm7, %v1406_v47, %v1404_v49  ;;  %v1409_v59 = vsel %vm1407_vm7, %v1404_v49, %v1406_v47 }
 0x19d   : > { %v1463_v62 = vmul.bf16 %v4188_v19, %v1419_v52 }
 0x19e   : > { %v1549_v54 = vpop.permute.xlu1 %1548 }
 0x19f   : > { %v1547_v56 = vpop.permute.xlu0 %1546 }
 0x1a0   : > { %v1562_v1 = vsel %vm1554_vm8, %v1549_v54, %v1547_v56 }
 0x1a2   : > { %v1553_v12 = vpop.permute.xlu1 %1552 }
 0x1a3   : > { %3384 = vmatmul.mubr.msk.bf16.vlgmr.msra.gmra.mrb[0].mxu1 %vm894_vm4, %v3724_v63  ;;  %v1551_v14 = vpop.permute.xlu0 %1550 }
 0x1a4   : > { %1257 = vmatpush1.bf16.msra.mxu1 %v1231_v5  ;;  %1151 = vmatprep.mubr.bf16.mxu1 %v3796_v0  ;;  %v3425_v5 = vld.sshfl [vmem:[%s4636_s7 + $0xe] sm:$0x11 pattern:$0x75316420]  ;;  %v1566_v23 = vsel %vm1554_vm8, %v1553_v12, %v1551_v14 }
 0x1a5   : > { %1258 = vmatprep.subr.bf16.mxu1 %v1234_v7  ;;  %v1585_v7 = vrot.slane %v3415_v21, %v4071_v57  ;;  %v3730_v21 = vld [vmem:[%s4632_s3 + $0x50] sm:$0xff]  }
 0x1a8   : > { %1259 = vmatpush1.bf16.msra.mxu1 %v1233_v9  ;;  %v1725_v9 = vcombine.high %v3425_v5, %v3425_v5 }
 0x1a9   : > { %1338 = vmatprep.subr.bf16.mxu1 %v3962_v31  ;;  %v1415_v31 = vsel %vm1407_vm7, %v1402_v13, %v1400_v17  ;;  %v1555_v17 = vsel %vm1554_vm8, %v1547_v56, %v1549_v54  ;;  %v3731_v56 = vld [vmem:[%s4632_s3 + $0x58] sm:$0xff]  }
 0x1aa   : > { %v1461_v32 = vmul.bf16 %v4188_v19, %v1415_v31 }
 0x1ab   : > { %3385 = vmatmul.mubr.msk.bf16.gmra.mrb[4].mxu1 %vm894_vm4, %v3725_v11  ;;  %v1594_v11 = vpack.i.b16 %v1585_v7, %v1585_v7 }
 0x1ac   : > { %1288 = vmatprep.mubr.bf16.mxu1 %v3796_v0 }
 0x1ad   : > { %v4237_v13 = vrot.slane %v1594_v11, %v4076_v61 }
 0x1b3   : > { %3394 = vmatmul.mubr.msk.bf16.vlgmr.msra.gmra.mrb[0].mxu1 %vm894_vm4, %v3726_v15  ;;  %v1739_v15 = vrot.slane %v1725_v9, %v4071_v57 }
 0x1b4   : > { %1339 = vmatpush1.bf16.msra.mxu1 %v3956_v30  ;;  %1298 = vmatprep.mubr.bf16.mxu1 %v3796_v0  ;;  %v1592_v30 = vrot.slane %v1578_v34, %v4071_v57  ;;  %v1694_v34 = vpop.permute.xlu0 %1693 }
 0x1b5   : > { %1340 = vmatprep.subr.bf16.mxu1 %v3990_v46  ;;  %v4208_v46 = vrot.slane %v1447_v39, %v4076_v61  ;;  %v1748_v31 = vpack.i.b16 %v1739_v15, %v1739_v15  ;;  %v1556_v39 = vsel %vm1554_vm8, %v1551_v14, %v1553_v12 }
 0x1b6   : > { %v1601_v51 = vpack.i.b16 %v1592_v30, %v1592_v30 }
 0x1b7   : > { %v1460_v58 = vmul.bf16 %v4208_v46, %v1408_v50  ;;  %v1462_v6 = vmul.bf16 %v4208_v46, %v1409_v59  ;;  %v4248_v49 = vrot.slane %v1748_v31, %v4076_v61  ;;  %v3435_v50 = vld.sshfl [vmem:[%s4636_s7 + $0x10] sm:$0x11 pattern:$0x75316420] }
 0x1b8   : > { %1341 = vmatpush1.bf16.msra.mxu1 %v3984_v45  ;;  %v3728_v45 = vld [vmem:[%s4632_s3 + $0x40] sm:$0xff]   ;;  %v4219_v63 = vrot.slane %v1601_v51, %v4076_v61  ;;  %v1609_v51 = vmul.bf16 %v4237_v13, %v1556_v39  ;;  %v1872_v54 = vcombine.high %v3435_v50, %v3435_v50 }
 0x1b9   : > { %1485 = vmatprep.subr.bf16.mxu1 %v1461_v32  ;;  %v1696_v32 = vpop.permute.xlu1 %1695 }
 0x1ba   : > { %v1608_v8 = vmul.bf16 %v4219_v63, %v1562_v1  ;;  %v1610_v47 = vmul.bf16 %v4219_v63, %v1566_v23  ;;  %v1709_v30 = vsel %vm1701_vm9, %v1696_v32, %v1694_v34  ;;  %v1886_v1 = vrot.slane %v1872_v54, %v4071_v57 }
 0x1bb   : > { %3395 = vmatmul.mubr.msk.bf16.gmra.mrb[4].mxu1 %vm894_vm4, %v3727_v37  ;;  %v1607_v37 = vmul.bf16 %v4237_v13, %v1555_v17  ;;  %v1755_v52 = vmul.bf16 %v4248_v49, %v1709_v30  ;;  %v1879_v23 = vrot.slane %v3435_v50, %v4071_v57 }
 0x1bc   : > { %1370 = vmatprep.mubr.bf16.mxu1 %v3796_v0  ;;  %v1895_v7 = vpack.i.b16 %v1886_v1, %v1886_v1  ;;  %v3737_v1 = vld [vmem:[%s4632_s3 + $0x88] sm:$0xff]  }
 0x1bd   : > { %v1700_v59 = vpop.permute.xlu1 %1699 }
 0x1be   : > { %v4277_v17 = vrot.slane %v1895_v7, %v4076_v61 }
 0x1c3   : > { %3402 = vmatmul.mubr.msk.bf16.vlgmr.msra.gmra.mrb[0].mxu1 %vm894_vm4, %v3728_v45  ;;  %v1732_v45 = vrot.slane %v3425_v5, %v4071_v57 }
 0x1c4   : > { %1486 = vmatpush1.bf16.msra.mxu1 %v1460_v58  ;;  %1380 = vmatprep.mubr.bf16.mxu1 %v3796_v0 }
 0x1c5   : > { %1487 = vmatprep.subr.bf16.mxu1 %v1463_v62  ;;  %v1741_v58 = vpack.i.b16 %v1732_v45, %v1732_v45  ;;  %v1698_v62 = vpop.permute.xlu0 %1697 }
 0x1c6   : > { %v1713_v9 = vsel %vm1701_vm9, %v1700_v59, %v1698_v62  ;;  %v1703_v14 = vsel %vm1701_vm9, %v1698_v62, %v1700_v59  ;;  %v3735_v59 = vld [vmem:[%s4632_s3 + $0x78] sm:$0xff]   ;;  %v3736_v62 = vld [vmem:[%s4632_s3 + $0x80] sm:$0xff]  }
 0x1c7   : > { %v4266_v5 = vrot.slane %v1741_v58, %v4076_v61  ;;  %v1757_v15 = vmul.bf16 %v4248_v49, %v1713_v9 }
 0x1c8   : > { %1488 = vmatpush1.bf16.msra.mxu1 %v1462_v6  ;;  %v1702_v6 = vsel %vm1701_vm9, %v1694_v34, %v1696_v32  ;;  %v3733_v34 = vld [vmem:[%s4632_s3 + $0x68] sm:$0xff]  }
 0x1c9   : > { %1632 = vmatprep.subr.bf16.mxu1 %v1608_v8  ;;  %v3732_v8 = vld [vmem:[%s4632_s3 + $0x60] sm:$0xff]   ;;  %v1841_v11 = vpop.permute.xlu0 %1840  ;;  %v1754_v12 = vmul.bf16 %v4266_v5, %v1702_v6 }
 0x1cb   : > { %3403 = vmatmul.mubr.msk.bf16.gmra.mrb[4].mxu1 %vm894_vm4, %v3729_v10  ;;  %v1843_v10 = vpop.permute.xlu1 %1842 }
 0x1cc   : > { %1517 = vmatprep.mubr.bf16.mxu1 %v3796_v0  ;;  %v1856_v31 = vsel %vm1848_vm10, %v1843_v10, %v1841_v11  ;;  %v1849_v50 = vsel %vm1848_vm10, %v1841_v11, %v1843_v10 }
 0x1cd   : > { %v1902_v32 = vmul.bf16 %v4277_v17, %v1856_v31 }
 0x1cf   : > { %v1847_v39 = vpop.permute.xlu1 %1846 }
 0x1d3   : > { %3412 = vmatmul.mubr.msk.bf16.vlgmr.msra.gmra.mrb[0].mxu1 %vm894_vm4, %v3730_v21  ;;  %v1756_v21 = vmul.bf16 %v4266_v5, %v1703_v14  ;;  %v1999_v10 = vpop.permute.xlu1 %1998 }
 0x1d4   : > { %1633 = vmatpush1.bf16.msra.mxu1 %v1607_v37  ;;  %1527 = vmatprep.mubr.bf16.mxu1 %v3796_v0  ;;  %v1888_v37 = vpack.i.b16 %v1879_v23, %v1879_v23 }
 0x1d5   : > { %1634 = vmatprep.subr.bf16.mxu1 %v1610_v47  ;;  %v1845_v47 = vpop.permute.xlu0 %1844 }
 0x1d6   : > { %v4291_v30 = vrot.slane %v1888_v37, %v4076_v61  ;;  %v1860_v45 = vsel %vm1848_vm10, %v1847_v39, %v1845_v47  ;;  %v1850_v54 = vsel %vm1848_vm10, %v1845_v47, %v1847_v39 }
 0x1d8   : > { %1635 = vmatpush1.bf16.msra.mxu1 %v1609_v51  ;;  %v3734_v51 = vld [vmem:[%s4632_s3 + $0x70] sm:$0xff]   ;;  %v1903_v58 = vmul.bf16 %v4291_v30, %v1850_v54 }
 0x1d9   : > { %1779 = vmatprep.subr.bf16.mxu1 %v1755_v52  ;;  %v1901_v52 = vmul.bf16 %v4291_v30, %v1849_v50  ;;  %v1994_v6 = vpop.permute.xlu0 %1993 }
 0x1db   : > { %3413 = vmatmul.mubr.msk.bf16.gmra.mrb[4].mxu1 %vm894_vm4, %v3731_v56  ;;  %v1904_v56 = vmul.bf16 %v4277_v17, %v1860_v45 }
 0x1dc   : > { %1664 = vmatprep.mubr.bf16.mxu1 %v3796_v0 }
 0x1dd   : > { %v2004_v39 = vpop.permute.xlu0 %2003 }
 0x1e3   : > { %3422 = vmatmul.mubr.msk.bf16.vlgmr.msra.gmra.mrb[0].mxu1 %vm894_vm4, %v3732_v8 }
 0x1e4   : > { %1780 = vmatpush1.bf16.msra.mxu1 %v1754_v12  ;;  %1674 = vmatprep.mubr.bf16.mxu1 %v3796_v0 }
 0x1e5   : > { %1781 = vmatprep.subr.bf16.mxu1 %v1757_v15 }
 0x1e8   : > { %1782 = vmatpush1.bf16.msra.mxu1 %v1756_v21 }
 0x1e9   : > { %1926 = vmatprep.subr.bf16.mxu1 %v1902_v32 }
 0x1eb   : > { %3423 = vmatmul.mubr.msk.bf16.gmra.mrb[4].mxu1 %vm894_vm4, %v3733_v34 }
 0x1ec   : > { %1811 = vmatprep.mubr.bf16.mxu1 %v3796_v0 }
 0x1f3   : > { %3432 = vmatmul.mubr.msk.bf16.vlgmr.msra.gmra.mrb[0].mxu1 %vm894_vm4, %v3734_v51 }
 0x1f4   : > { %1927 = vmatpush1.bf16.msra.mxu1 %v1901_v52  ;;  %1821 = vmatprep.mubr.bf16.mxu1 %v3796_v0  ;;  %v2009_v52 = vpop.permute.xlu1 %2008 }
 0x1f5   : > { %1928 = vmatprep.subr.bf16.mxu1 %v1904_v56 }
 0x1f8   : > { %1929 = vmatpush1.bf16.msra.mxu1 %v1903_v58 }
 0x1fb   : > { %3433 = vmatmul.mubr.msk.bf16.gmra.mrb[4].mxu1 %vm894_vm4, %v3735_v59 }
 0x1fc   : > { %1958 = vmatprep.mubr.bf16.mxu1 %v3796_v0 }
 0x203   : > { %3442 = vmatmul.mubr.msk.bf16.vlgmr.msra.gmra.mrb[0].mxu1 %vm894_vm4, %v3736_v62 }
 0x204   : > { %1968 = vmatprep.mubr.bf16.mxu1 %v3796_v0 }
 0x20b   : > { %3443 = vmatmul.mubr.msk.bf16.gmra.mrb[4].mxu1 %vm894_vm4, %v3737_v1 }
 0x20c   : > { %2150 = vmatprep.mubr.bf16.mxu1 %v3796_v0 }
 0x2d6   : > { %v1960_v7 = vpop.f32.mrb[0].mxu1 }
 0x2d7   : > { %v2011_v8 = vadd.f32 %v1994_v6, %v1960_v7  ;;  %v1962_v9 = vpop.f32.mrb[1].mxu1 }
 0x2d8   : > { %v2012_v11 = vadd.f32 %v1994_v6, %v1962_v9  ;;  %v1964_v12 = vpop.f32.mrb[2].mxu1 }
 0x2d9   : > { %v2013_v14 = vadd.f32 %v1999_v10, %v1964_v12  ;;  %v1966_v15 = vpop.f32.mrb[3].mxu1  ;;  %v2019_v21 = vmax.f32 %v2011_v8, 0.0  ;;  %v2948_v12 = vld [vmem:[%s4635_s6] sm:$0xff] }
 0x2da   : > { %v2014_v31 = vadd.f32 %v1999_v10, %v1966_v15  ;;  %v2020_v32 = vmax.f32 %v2012_v11, 0.0  ;;  %v2949_v11 = vld [vmem:[%s4635_s6 + $0x8] sm:$0xff]  ;;  %v2950_v15 = vld [vmem:[%s4635_s6 + $0x10] sm:$0xff] }
 0x2db   : > { %v2021_v23 = vmax.f32 %v2013_v14, 0.0  ;;  %v2951_v14 = vld [vmem:[%s4635_s6 + $0x18] sm:$0xff] }
 0x2dc   : > { %v2022_v34 = vmax.f32 %v2014_v31, 0.0 }
 0x2dd   : > { %v4319_v37 = vpack.c.bf16 %v2021_v23, %v2019_v21 }
 0x2de   : > { %v4321_v47 = vpack.c.bf16 %v2022_v34, %v2020_v32  ;;  %v1970_v50 = vpop.f32.mrb[4].mxu1 }
 0x2df   : > { %v2015_v51 = vadd.f32 %v2004_v39, %v1970_v50  ;;  %v1972_v45 = vpop.f32.mrb[5].mxu1  ;;  %2067 = vrot.lane.b32.xlu1 %v4319_v37, %s3797_s20 }
 0x2e0   : > { %v2016_v54 = vadd.f32 %v2004_v39, %v1972_v45  ;;  %v1974_v56 = vpop.f32.mrb[6].mxu1  ;;  %2063 = vrot.lane.b32.xlu0 %v4321_v47, %s3797_s20 }
 0x2e1   : > { %v2017_v58 = vadd.f32 %v2009_v52, %v1974_v56  ;;  %v1976_v59 = vpop.f32.mrb[7].mxu1  ;;  %v2023_v1 = vmax.f32 %v2015_v51, 0.0 }
 0x2e2   : > { %v2018_v62 = vadd.f32 %v2009_v52, %v1976_v59  ;;  %v2024_v7 = vmax.f32 %v2016_v54, 0.0 }
 0x2e3   : > { %v2025_v6 = vmax.f32 %v2017_v58, 0.0 }
 0x2e4   : > { %v2026_v8 = vmax.f32 %v2018_v62, 0.0 }
 0x2e5   : > { %v4327_v9 = vpack.c.bf16 %v2025_v6, %v2023_v1  ;;  %v3738_v1 = vld [vmem:[%s4634_s5 + $0x10] sm:$0xff]  }
 0x2e6   : > { %v4329_v10 = vpack.c.bf16 %v2026_v8, %v2024_v7 }
 0x2e7   : > { %2069 = vrot.lane.b32.xlu1 %v4327_v9, %s3797_s20 }
 0x2e8   : > { %2065 = vrot.lane.b32.xlu0 %v4329_v10, %s3797_s20  ;;  %s4655_s20 = smov 1  }
 0x2eb   : > { %2039 = vrot.lane.b32.xlu1 %v4319_v37, %s3798_s21 }
 0x2ec   : > { %2033 = vrot.lane.b32.xlu0 %v4321_v47, %s3798_s21 }
 0x2ef   : > { %2041 = vrot.lane.b32.xlu1 %v4327_v9, %s3798_s21 }
 0x2f0   : > { %2035 = vrot.lane.b32.xlu0 %v4329_v10, %s3798_s21  ;;  %s4656_s21 = smov 127  }
 0x2f3   : > { %2234 = vrot.lane.b32.xlu1 %v4319_v37, %s3799_s22 }
 0x2f4   : > { %2230 = vrot.lane.b32.xlu0 %v4321_v47, %s3799_s22 }
 0x2f7   : > { %2236 = vrot.lane.b32.xlu1 %v4327_v9, %s3799_s22 }
 0x2f8   : > { %2232 = vrot.lane.b32.xlu0 %v4329_v10, %s3799_s22  ;;  %s4657_s22 = smov 113  }
 0x2fb   : > { %2340 = vrot.lane.b32.xlu1 %v4319_v37, %s4655_s20 }
 0x2fc   : > { %2336 = vrot.lane.b32.xlu0 %v4321_v47, %s4655_s20 }
 0x2ff   : > { %2342 = vrot.lane.b32.xlu1 %v4327_v9, %s4655_s20 }
 0x300   : > { %2338 = vrot.lane.b32.xlu0 %v4329_v10, %s4655_s20 }
 0x303   : > { %2526 = vrot.lane.b32.xlu1 %v4321_v47, %s4656_s21 }
 0x304   : > { %2524 = vrot.lane.b32.xlu0 %v4319_v37, %s4656_s21 }
 0x307   : > { %2530 = vrot.lane.b32.xlu1 %v4329_v10, %s4656_s21 }
 0x308   : > { %2528 = vrot.lane.b32.xlu0 %v4327_v9, %s4656_s21  ;;  %s586_s21 = scalar_lea.vmem %s4641_s12, %s577_s23 }
 0x309   : > { %v3084_v40 = vld [vmem:[%s586_s21] sm:$0x3] }
 0x30b   : > { %2632 = vrot.lane.b32.xlu1 %v4321_v47, %s4657_s22 }
 0x30c   : > { %2630 = vrot.lane.b32.xlu0 %v4319_v37, %s4657_s22 }
 0x30f   : > { %2636 = vrot.lane.b32.xlu1 %v4329_v10, %s4657_s22 }
 0x310   : > { %2634 = vrot.lane.b32.xlu0 %v4327_v9, %s4657_s22  ;;  %s563_s22 = scalar_lea.vmem %s4638_s9, %s4672_s26 }
 0x311   : > { %v3071_v31 = vld [vmem:[%s563_s22] sm:$0x1] }
 0x313   : > { %2738 = vrot.lane.b32.xlu1 %v4321_v47, %s4658_s15 }
 0x314   : > { %2736 = vrot.lane.b32.xlu0 %v4319_v37, %s4658_s15 }
 0x317   : > { %2742 = vrot.lane.b32.xlu1 %v4329_v10, %s4658_s15 }
 0x318   : > { %2740 = vrot.lane.b32.xlu0 %v4327_v9, %s4658_s15  ;;  %s3343_s15 = sshll.u32 %s4672_s26, 3 }
 0x319   : > { %s560_s14 = scalar_lea.vmem %s4637_s8, %s3343_s15 }
 0x31a   : > { %v2996_v36 = vld [vmem:[%s560_s14] sm:$0xff] }
 0x31b   : > { %2844 = vrot.lane.b32.xlu1 %v4321_v47, %s3804_s17 }
 0x31c   : > { %2842 = vrot.lane.b32.xlu0 %v4319_v37, %s3804_s17 }
 0x31f   : > { %2848 = vrot.lane.b32.xlu1 %v4329_v10, %s3804_s17 }
 0x320   : > { %2846 = vrot.lane.b32.xlu0 %v4327_v9, %s3804_s17 }
 0x323   : > { %2959 = vperm.xlu1 %3709, %v2949_v11  }
 0x324   : > { %2954 = vperm.xlu0 %3708, %v2948_v12  }
 0x327   : > { %2969 = vperm.xlu1 %3709, %v2951_v14  }
 0x328   : > { %2964 = vperm.xlu0 %3708, %v2950_v15  }
 0x32c   : > { %3074 = vperm.xlu0 %3708, %v3071_v31  }
 0x351   : > { %v2068_v21 = vpop.permute.xlu1 %2067 }
 0x352   : > { %v2064_v23 = vpop.permute.xlu0 %2063 }
 0x353   : > { %v2071_v32 = vsel %vm822_vm2, %v2068_v21, %v2064_v23  ;;  %v2077_v34 = vsel %vm822_vm2, %v2064_v23, %v2068_v21 }
 0x354   : > { %v2083_v39 = vmul.bf16 %v2077_v34, %v4085_v3  ;;  %v2084_v50 = vmul.bf16 %v2071_v32, %v4082_v2 }
 0x356   : > { %2108 = vmatprep.subr.bf16.mxu0 %v2084_v50  ;;  %3523 = vmatprep.subr.bf16.mxu1 %v2084_v50 }
 0x357   : > { %2109 = vmatpush1.bf16.msra.mxu0 %v2083_v39  ;;  %3525 = vmatpush1.bf16.msra.mxu1 %v2083_v39 }
 0x359   : > { %v2070_v51 = vpop.permute.xlu1 %2069 }
 0x35a   : > { %v2066_v45 = vpop.permute.xlu0 %2065 }
 0x35b   : > { %v2072_v52 = vsel %vm822_vm2, %v2070_v51, %v2066_v45  ;;  %v2081_v54 = vsel %vm822_vm2, %v2066_v45, %v2070_v51 }
 0x35c   : > { %v2085_v56 = vmul.bf16 %v2081_v54, %v4085_v3  ;;  %v2086_v58 = vmul.bf16 %v2072_v52, %v4082_v2  ;;  %v3754_v2 = vld [vmem:[%s4634_s5 + $0x18] sm:$0xff]  }
 0x35d   : > { %v2040_v59 = vpop.permute.xlu1 %2039 }
 0x35e   : > { %v2034_v62 = vpop.permute.xlu0 %2033  ;;  %2110 = vmatprep.subr.bf16.mxu0 %v2086_v58  ;;  %3524 = vmatprep.subr.bf16.mxu1 %v2086_v58 }
 0x35f   : > { %v2043_v6 = vsel %vm754_vm3, %v2040_v59, %v2034_v62  ;;  %v2049_v7 = vsel %vm754_vm3, %v2034_v62, %v2040_v59  ;;  %2111 = vmatpush1.bf16.msra.mxu0 %v2085_v56  ;;  %3526 = vmatpush1.bf16.msra.mxu1 %v2085_v56 }
 0x360   : > { %v2055_v8 = vmul.bf16 %v2049_v7, %v4099_v24  ;;  %v2056_v3 = vmul.bf16 %v2043_v6, %v4104_v35 }
 0x361   : > { %v2042_v11 = vpop.permute.xlu1 %2041 }
 0x362   : > { %v2036_v12 = vpop.permute.xlu0 %2035  ;;  %3450 = vmatmul.mubr.msk.bf16.vlgmr.msra.gmra.mrb[8].mxu0 %vm894_vm4, %v3738_v1  ;;  %2177 = vmatprep.subr.bf16.mxu0 %v2056_v3 }
 0x363   : > { %v2044_v14 = vsel %vm754_vm3, %v2042_v11, %v2036_v12  ;;  %v2053_v15 = vsel %vm754_vm3, %v2036_v12, %v2042_v11  ;;  %2178 = vmatpush1.bf16.msra.mxu0 %v2055_v8  ;;  %2209 = vmatprep.mubr.bf16.mxu0 %v3796_v0 }
 0x364   : > { %v2057_v31 = vmul.bf16 %v2053_v15, %v4099_v24  ;;  %v2058_v21 = vmul.bf16 %v2044_v14, %v4104_v35  ;;  %3451 = vmatmul.mubr.msk.bf16.vlgmr.msra.gmra.mrb[8].mxu1 %vm894_vm4, %v3754_v2  ;;  %v3739_v24 = vld [vmem:[%s4634_s5] sm:$0xff]  }
 0x365   : > { %v2235_v23 = vpop.permute.xlu1 %2234  ;;  %v3741_v2 = vld [vmem:[%s4634_s5 + $0x20] sm:$0xff]  }
 0x366   : > { %v2231_v32 = vpop.permute.xlu0 %2230  ;;  %2179 = vmatprep.subr.bf16.mxu0 %v2058_v21 }
 0x367   : > { %v2238_v34 = vsel %vm1031_vm5, %v2235_v23, %v2231_v32  ;;  %2180 = vmatpush1.bf16.msra.mxu0 %v2057_v31  ;;  %v2244_v51 = vsel %vm1031_vm5, %v2231_v32, %v2235_v23  ;;  %v3742_v31 = vld [vmem:[%s4634_s5 + $0x28] sm:$0xff]   ;;  %v3744_v32 = vld [vmem:[%s4634_s5 + $0x38] sm:$0xff]  }
 0x368   : > { %v2251_v39 = vmul.bf16 %v2238_v34, %v4124_v4  ;;  %v2250_v54 = vmul.bf16 %v2244_v51, %v4136_v16 }
 0x369   : > { %v2237_v50 = vpop.permute.xlu1 %2236 }
 0x36a   : > { %v2233_v45 = vpop.permute.xlu0 %2232  ;;  %2275 = vmatprep.subr.bf16.mxu0 %v2251_v39 }
 0x36b   : > { %v2239_v35 = vsel %vm1031_vm5, %v2237_v50, %v2233_v45  ;;  %v2248_v58 = vsel %vm1031_vm5, %v2233_v45, %v2237_v50 }
 0x36c   : > { %v2253_v52 = vmul.bf16 %v2239_v35, %v4124_v4  ;;  %v2252_v6 = vmul.bf16 %v2248_v58, %v4136_v16  ;;  %v3740_v4 = vld [vmem:[%s4634_s5 + $0x8] sm:$0xff]  }
 0x36d   : > { %v2341_v56 = vpop.permute.xlu1 %2340  ;;  %v3746_v58 = vld [vmem:[%s4634_s5 + $0x48] sm:$0xff]  }
 0x36e   : > { %v2337_v59 = vpop.permute.xlu0 %2336  ;;  %3454 = vmatmul.mubr.msk.bf16.vlgmr.msra.gmra.mrb[8].mxu0 %vm894_vm4, %v3739_v24 }
 0x36f   : > { %v2344_v62 = vsel %vm1178_vm6, %v2341_v56, %v2337_v59  ;;  %2276 = vmatpush1.bf16.msra.mxu0 %v2250_v54  ;;  %2219 = vmatprep.mubr.bf16.mxu0 %v3796_v0  ;;  %v2350_v3 = vsel %vm1178_vm6, %v2337_v59, %v2341_v56 }
 0x370   : > { %v2357_v1 = vmul.bf16 %v2344_v62, %v4147_v48  ;;  %2277 = vmatprep.subr.bf16.mxu0 %v2253_v52  ;;  %v2356_v11 = vmul.bf16 %v2350_v3, %v4161_v60 }
 0x371   : > { %v2343_v7 = vpop.permute.xlu1 %2342 }
 0x372   : > { %v2339_v8 = vpop.permute.xlu0 %2338 }
 0x373   : > { %2278 = vmatpush1.bf16.msra.mxu0 %v2252_v6  ;;  %v2345_v16 = vsel %vm1178_vm6, %v2343_v7, %v2339_v8  ;;  %v2354_v12 = vsel %vm1178_vm6, %v2339_v8, %v2343_v7 }
 0x374   : > { %2381 = vmatprep.subr.bf16.mxu0 %v2357_v1  ;;  %v2359_v14 = vmul.bf16 %v2345_v16, %v4147_v48  ;;  %v2358_v15 = vmul.bf16 %v2354_v12, %v4161_v60  ;;  %v3743_v48 = vld [vmem:[%s4634_s5 + $0x30] sm:$0xff]   ;;  %v3748_v12 = vld [vmem:[%s4634_s5 + $0x58] sm:$0xff]  }
 0x375   : > { %v2527_v21 = vpop.permute.xlu1 %2526 }
 0x376   : > { %3455 = vmatmul.mubr.msk.bf16.gmra.mrb[12].mxu0 %vm894_vm4, %v3740_v4  ;;  %v2525_v23 = vpop.permute.xlu0 %2524 }
 0x377   : > { %2307 = vmatprep.mubr.bf16.mxu0 %v3796_v0  ;;  %v2538_v60 = vsel %vm1407_vm7, %v2527_v21, %v2525_v23 }
 0x379   : > { %v2531_v34 = vpop.permute.xlu1 %2530 }
 0x37a   : > { %v2529_v39 = vpop.permute.xlu0 %2528 }
 0x37b   : > { %v2542_v50 = vsel %vm1407_vm7, %v2531_v34, %v2529_v39 }
 0x37c   : > { %v2547_v35 = vmul.bf16 %v2542_v50, %v4188_v19 }
 0x37d   : > { %v2633_v51 = vpop.permute.xlu1 %2632 }
 0x37e   : > { %3462 = vmatmul.mubr.msk.bf16.vlgmr.msra.gmra.mrb[8].mxu0 %vm894_vm4, %v3741_v2  ;;  %v2631_v45 = vpop.permute.xlu0 %2630 }
 0x37f   : > { %2382 = vmatpush1.bf16.msra.mxu0 %v2356_v11  ;;  %2317 = vmatprep.mubr.bf16.mxu0 %v3796_v0  ;;  %v2644_v52 = vsel %vm1554_vm8, %v2633_v51, %v2631_v45  ;;  %v2638_v62 = vsel %vm1554_vm8, %v2631_v45, %v2633_v51 }
 0x380   : > { %2383 = vmatprep.subr.bf16.mxu0 %v2359_v14  ;;  %v2651_v56 = vmul.bf16 %v2644_v52, %v4219_v63  ;;  %v2650_v7 = vmul.bf16 %v2638_v62, %v4237_v13  ;;  %v3752_v52 = vld [vmem:[%s4634_s5 + $0x78] sm:$0xff]  }
 0x381   : > { %v2637_v59 = vpop.permute.xlu1 %2636 }
 0x383   : > { %2384 = vmatpush1.bf16.msra.mxu0 %v2358_v15 }
 0x384   : > { %2463 = vmatprep.subr.bf16.mxu0 %v4321_v47  ;;  %v2545_v47 = vmul.bf16 %v2538_v60, %v4188_v19  ;;  %v2635_v19 = vpop.permute.xlu0 %2634 }
 0x385   : > { %v2648_v1 = vsel %vm1554_vm8, %v2637_v59, %v2635_v19  ;;  %v2739_v6 = vpop.permute.xlu1 %2738  ;;  %v2639_v8 = vsel %vm1554_vm8, %v2635_v19, %v2637_v59  ;;  %v3806_v19 = vmov 0.0  }
 0x386   : > { %3463 = vmatmul.mubr.msk.bf16.gmra.mrb[12].mxu0 %vm894_vm4, %v3742_v31  ;;  %v2653_v3 = vmul.bf16 %v2648_v1, %v4219_v63  ;;  %v2652_v16 = vmul.bf16 %v2639_v8, %v4237_v13  ;;  %v3749_v13 = vld [vmem:[%s4634_s5 + $0x60] sm:$0xff]   ;;  %3064 = vmatprep.mubr.f32.mxu1 %v3806_v19 }
 0x387   : > { %2413 = vmatprep.mubr.bf16.mxu0 %v3796_v0 }
 0x388   : > { %v2737_v4 = vpop.permute.xlu0 %2736 }
 0x389   : > { %v2750_v2 = vsel %vm1701_vm9, %v2739_v6, %v2737_v4  ;;  %v2743_v14 = vpop.permute.xlu1 %2742  ;;  %v2744_v15 = vsel %vm1701_vm9, %v2737_v4, %v2739_v6 }
 0x38a   : > { %v2757_v11 = vmul.bf16 %v2750_v2, %v4248_v49 }
 0x38c   : > { %v2741_v63 = vpop.permute.xlu0 %2740 }
 0x38d   : > { %v2754_v31 = vsel %vm1701_vm9, %v2743_v14, %v2741_v63  ;;  %v2745_v60 = vsel %vm1701_vm9, %v2741_v63, %v2743_v14 }
 0x38e   : > { %3470 = vmatmul.mubr.msk.bf16.vlgmr.msra.gmra.mrb[8].mxu0 %vm894_vm4, %v3743_v48  ;;  %v2845_v48 = vpop.permute.xlu1 %2844 }
 0x38f   : > { %2464 = vmatpush1.bf16.msra.mxu0 %v4319_v37  ;;  %2423 = vmatprep.mubr.bf16.mxu0 %v3796_v0  ;;  %v2532_v37 = vsel %vm1407_vm7, %v2525_v23, %v2527_v21  ;;  %v2756_v23 = vmul.bf16 %v2744_v15, %v4266_v5 }
 0x390   : > { %2465 = vmatprep.subr.bf16.mxu0 %v4329_v10  ;;  %v3745_v10 = vld [vmem:[%s4634_s5 + $0x40] sm:$0xff]   ;;  %v2544_v24 = vmul.bf16 %v2532_v37, %v4208_v46  ;;  %v2843_v21 = vpop.permute.xlu0 %2842  ;;  %v3750_v37 = vld [vmem:[%s4634_s5 + $0x68] sm:$0xff]  }
 0x391   : > { %v2850_v50 = vsel %vm1848_vm10, %v2843_v21, %v2845_v48 }
 0x392   : > { %v2862_v45 = vmul.bf16 %v2850_v50, %v4291_v30 }
 0x393   : > { %2466 = vmatpush1.bf16.msra.mxu0 %v4327_v9  ;;  %v2533_v9 = vsel %vm1407_vm7, %v2529_v39, %v2531_v34  ;;  %v2758_v34 = vmul.bf16 %v2745_v60, %v4266_v5  ;;  %v3751_v5 = vld [vmem:[%s4634_s5 + $0x70] sm:$0xff]  }
 0x394   : > { %2569 = vmatprep.subr.bf16.mxu0 %v2545_v47  ;;  %v2546_v54 = vmul.bf16 %v2533_v9, %v4208_v46  ;;  %v3747_v46 = vld [vmem:[%s4634_s5 + $0x50] sm:$0xff]   ;;  %v2759_v47 = vmul.bf16 %v2754_v31, %v4248_v49  ;;  %v2849_v49 = vpop.permute.xlu1 %2848 }
 0x396   : > { %3471 = vmatmul.mubr.msk.bf16.gmra.mrb[12].mxu0 %vm894_vm4, %v3744_v32  ;;  %v2856_v32 = vsel %vm1848_vm10, %v2845_v48, %v2843_v21 }
 0x397   : > { %2495 = vmatprep.mubr.bf16.mxu0 %v3796_v0  ;;  %v2863_v39 = vmul.bf16 %v2856_v32, %v4277_v17 }
 0x39e   : > { %3478 = vmatmul.mubr.msk.bf16.vlgmr.msra.gmra.mrb[8].mxu0 %vm894_vm4, %v3745_v10  ;;  %v2847_v10 = vpop.permute.xlu0 %2846 }
 0x39f   : > { %2570 = vmatpush1.bf16.msra.mxu0 %v2544_v24  ;;  %2505 = vmatprep.mubr.bf16.mxu0 %v3796_v0  ;;  %v2860_v51 = vsel %vm1848_vm10, %v2849_v49, %v2847_v10  ;;  %v2851_v24 = vsel %vm1848_vm10, %v2847_v10, %v2849_v49 }
 0x3a0   : > { %2571 = vmatprep.subr.bf16.mxu0 %v2547_v35  ;;  %v2865_v9 = vmul.bf16 %v2860_v51, %v4277_v17  ;;  %v2864_v35 = vmul.bf16 %v2851_v24, %v4291_v30  ;;  %v3753_v17 = vld [vmem:[%s4634_s5 + $0x80] sm:$0xff]   ;;  %v3755_v30 = vld [vmem:[%s4634_s5 + $0x88] sm:$0xff]  }
 0x3a2   : > { %v2960_v4 = vpop.permute.xlu1 %2959 }
 0x3a3   : > { %2572 = vmatpush1.bf16.msra.mxu0 %v2546_v54  ;;  %v2955_v62 = vpop.permute.xlu0 %2954 }
 0x3a4   : > { %2675 = vmatprep.subr.bf16.mxu0 %v2651_v56 }
 0x3a6   : > { %3479 = vmatmul.mubr.msk.bf16.gmra.mrb[12].mxu0 %vm894_vm4, %v3746_v58 }
 0x3a7   : > { %2601 = vmatprep.mubr.bf16.mxu0 %v3796_v0 }
 0x3ae   : > { %3486 = vmatmul.mubr.msk.bf16.vlgmr.msra.gmra.mrb[8].mxu0 %vm894_vm4, %v3747_v46 }
 0x3af   : > { %2676 = vmatpush1.bf16.msra.mxu0 %v2650_v7  ;;  %2611 = vmatprep.mubr.bf16.mxu0 %v3796_v0 }
 0x3b0   : > { %2677 = vmatprep.subr.bf16.mxu0 %v2653_v3 }
 0x3b3   : > { %2678 = vmatpush1.bf16.msra.mxu0 %v2652_v16 }
 0x3b4   : > { %2781 = vmatprep.subr.bf16.mxu0 %v2757_v11 }
 0x3b6   : > { %3487 = vmatmul.mubr.msk.bf16.gmra.mrb[12].mxu0 %vm894_vm4, %v3748_v12 }
 0x3b7   : > { %2707 = vmatprep.mubr.bf16.mxu0 %v3796_v0 }
 0x3be   : > { %3494 = vmatmul.mubr.msk.bf16.vlgmr.msra.gmra.mrb[8].mxu0 %vm894_vm4, %v3749_v13 }
 0x3bf   : > { %2782 = vmatpush1.bf16.msra.mxu0 %v2756_v23  ;;  %2717 = vmatprep.mubr.bf16.mxu0 %v3796_v0  ;;  %v2965_v23 = vpop.permute.xlu0 %2964 }
 0x3c0   : > { %2783 = vmatprep.subr.bf16.mxu0 %v2759_v47 }
 0x3c3   : > { %2784 = vmatpush1.bf16.msra.mxu0 %v2758_v34  ;;  %v3075_v38 = vpop.permute.xlu0 %3074 }
 0x3c4   : > { %2887 = vmatprep.subr.bf16.mxu0 %v2863_v39 }
 0x3c6   : > { %3495 = vmatmul.mubr.msk.bf16.gmra.mrb[12].mxu0 %vm894_vm4, %v3750_v37 }
 0x3c7   : > { %2813 = vmatprep.mubr.bf16.mxu0 %v3796_v0 }
 0x3ce   : > { %3502 = vmatmul.mubr.msk.bf16.vlgmr.msra.gmra.mrb[8].mxu0 %vm894_vm4, %v3751_v5 }
 0x3cf   : > { %2888 = vmatpush1.bf16.msra.mxu0 %v2862_v45  ;;  %2823 = vmatprep.mubr.bf16.mxu0 %v3796_v0 }
 0x3d0   : > { %2889 = vmatprep.subr.bf16.mxu0 %v2865_v9  ;;  %v3112_v9 = vrot.slane %v3084_v40, %v4076_v61 }
 0x3d3   : > { %2890 = vmatpush1.bf16.msra.mxu0 %v2864_v35 }
 0x3d6   : > { %3503 = vmatmul.mubr.msk.bf16.gmra.mrb[12].mxu0 %vm894_vm4, %v3752_v52 }
 0x3d7   : > { %2919 = vmatprep.mubr.bf16.mxu0 %v3796_v0 }
 0x3de   : > { %3510 = vmatmul.mubr.msk.bf16.vlgmr.msra.gmra.mrb[8].mxu0 %vm894_vm4, %v3753_v17 }
 0x3df   : > { %2929 = vmatprep.mubr.bf16.mxu0 %v3796_v0 }
 0x3e6   : > { %3511 = vmatmul.mubr.msk.bf16.gmra.mrb[12].mxu0 %vm894_vm4, %v3755_v30 }
 0x437   : > { %v2152_v54 = vpop.f32.mrb[8].mxu1 }
 0x438   : > { %v2154_v56 = vpop.f32.mrb[9].mxu1 }
 0x439   : > { %v2156_v58 = vpop.f32.mrb[10].mxu1 }
 0x43a   : > { %v2158_v59 = vpop.f32.mrb[11].mxu1 }
 0x4b1   : > { %v2921_v46 = vpop.f32.mrb[8].mxu0 }
 0x4b2   : > { %v2972_v1 = vadd.f32 %v2955_v62, %v2921_v46  ;;  %v2923_v6 = vpop.f32.mrb[9].mxu0 }
 0x4b3   : > { %v2973_v7 = vadd.f32 %v2955_v62, %v2923_v6  ;;  %v2925_v8 = vpop.f32.mrb[10].mxu0 }
 0x4b4   : > { %v2980_v0 = vadd.f32 %v2972_v1, %v730_v26  ;;  %v2974_v3 = vadd.f32 %v2960_v4, %v2925_v8  ;;  %v2927_v2 = vpop.f32.mrb[11].mxu0 }
 0x4b5   : > { %v2981_v16 = vadd.f32 %v2973_v7, %v731_v28  ;;  %v2975_v11 = vadd.f32 %v2960_v4, %v2927_v2 }
 0x4b6   : > { %v2982_v12 = vadd.f32 %v2974_v3, %v732_v27  ;;  %v2988_v63 = vmax.f32 %v2980_v0, 0.0  ;;  %v2970_v27 = vpop.permute.xlu1 %2969 }
 0x4b7   : > { %v2983_v14 = vadd.f32 %v2975_v11, %v733_v29  ;;  %v2989_v13 = vmax.f32 %v2981_v16, 0.0 }
 0x4b8   : > { %v2990_v15 = vmax.f32 %v2982_v12, 0.0 }
 0x4b9   : > { %v2991_v31 = vmax.f32 %v2983_v14, 0.0  ;;  %v2931_v48 = vpop.f32.mrb[12].mxu0 }
 0x4ba   : > { %v3517_v21 = vpack.c.bf16 %v2990_v15, %v2988_v63  ;;  %v3527_v18 = vadd.f32 %v2931_v48, %v2152_v54  ;;  %v2933_v26 = vpop.f32.mrb[13].mxu0 }
 0x4bb   : > { %v3528_v60 = vadd.f32 %v2933_v26, %v2154_v56  ;;  %v2935_v47 = vpop.f32.mrb[14].mxu0  ;;  %v3515_v20 = vpack.c.bf16 %v2991_v31, %v2989_v13 }
 0x4bc   : > { %v2976_v28 = vadd.f32 %v3527_v18, %v2965_v23  ;;  %v3529_v32 = vadd.f32 %v2935_v47, %v2156_v58  ;;  %v2937_v22 = vpop.f32.mrb[15].mxu0 }
 0x4bd   : > { %v2977_v34 = vadd.f32 %v3528_v60, %v2965_v23  ;;  %v3530_v25 = vadd.f32 %v2937_v22, %v2158_v59  ;;  %3516 = vmatprep.subr.bf16.mxu1 %v3515_v20 }
 0x4be   : > { %v2984_v29 = vadd.f32 %v2976_v28, %v734_v41  ;;  %v2978_v39 = vadd.f32 %v3529_v32, %v2970_v27  ;;  %3518 = vmatpush1.bf16.msra.mxu1 %v3517_v21  ;;  %v3134_v32 = vand.u32 127, %v781_v53 }
 0x4bf   : > { %v2985_v37 = vadd.f32 %v2977_v34, %v735_v43  ;;  %v2979_v49 = vadd.f32 %v3530_v25, %v2970_v27  ;;  %v3083_v43 = vld [vmem:[%s578_s0] sm:$0x3]  ;;  %s3344_s0 = sshll.u32 %s4672_s26, 1 }
 0x4c0   : > { %v2986_v10 = vadd.f32 %v2978_v39, %v736_v42  ;;  %v2992_v5 = vmax.f32 %v2984_v29, 0.0  ;;  %v3094_v42 = vsub.s32 1, %v4065_v55  ;;  %v3091_v54 = vrot.slane %v3083_v43, %v4076_v61  ;;  %s569_s15 = sadd.s32 %s3344_s0, %s4674_s25 }
 0x4c1   : > { %v2987_v50 = vadd.f32 %v2979_v49, %v737_v44  ;;  %v2993_v45 = vmax.f32 %v2985_v37, 0.0  ;;  %v3080_v44 = vrot.slane %v3075_v38, %v4076_v61  ;;  %s570_s14 = scalar_lea.vmem %s4639_s10, %s569_s15  ;;  %vm3135_vm12 = vcmp.eq.s32.totalorder %v3134_v32, 0  ;;  %s593_s18 = scalar_lea.vmem %s4642_s13, %s569_s15 }
 0x4c2   : > { %v2994_v51 = vmax.f32 %v2986_v10, 0.0  ;;  %v3116_v52 = vrot.slane %v3084_v40, %v3094_v42  ;;  %v3095_v58 = vrot.slane %v3083_v43, %v3094_v42  ;;  %v3126_v47 = vld [vmem:[%s570_s14] sm:$0x1]  ;;  %vm3179_vm13 = vcmp.eq.s32.totalorder %v3134_v32, 1 }
 0x4c3   : > { %v2995_v33 = vmax.f32 %v2987_v50, 0.0 }
 0x4c4   : > { %v3521_v41 = vpack.c.bf16 %v2994_v51, %v2992_v5 }
 0x4c5   : > { %v3519_v24 = vpack.c.bf16 %v2995_v33, %v2993_v45 }
 0x4c7   : > { %3520 = vmatprep.subr.bf16.mxu1 %v3519_v24 }
 0x4c8   : > { %3522 = vmatpush1.bf16.msra.mxu1 %v3521_v41 }
 0x4cb   : > { %3512 = vmatmul.mubr.msk.f32.vlgmr.msra.gmra.mrb[12].mxu1 %vm894_vm4, %v2996_v36 }
 0x59e   : > { %v3066_v35 = vpop.f32.mrb[12].mxu1 }
 0x59f   : > { %v3081_v17 = vadd.f32 %v3080_v44, %v3066_v35  ;;  %v3068_v30 = vpop.f32.mrb[13].mxu1 }
 0x5a0   : > { %v3082_v56 = vadd.f32 %v3080_v44, %v3068_v30 }
 0x5a1   : > { %v3085_v59 = vmul.f32 2.0, %v3081_v17  ;;  %v3119_v19 = vmul.f32 %v3112_v9, %v3081_v17 }
 0x5a2   : > { %v3086_v62 = vmul.f32 2.0, %v3082_v56  ;;  %v3144_v46 = vcombine.low %v3081_v17, %v3082_v56  ;;  %v3120_v1 = vmul.f32 %v3116_v52, %v3082_v56 }
 0x5a3   : > { %v3121_v55 = vsel %vm3102_vm11, %v3119_v19, 0.0  ;;  %v3098_v6 = vsub.f32 %v3085_v59, %v3091_v54 }
 0x5a4   : > { %v3151_v4 = vrot.slane %v3144_v46, %v4071_v57  ;;  %v3122_v7 = vsel %vm3102_vm11, %v3120_v1, 0.0  ;;  %v3099_v8 = vsub.f32 %v3086_v62, %v3095_v58 }
 0x5a5   : > { %v3123_v0 = vadd.f32 %v3122_v7, %v3121_v55  ;;  %v3100_v3 = vmin.f32 %v3098_v6, 0.0 }
 0x5a6   : > { %v3101_v2 = vmin.f32 %v3099_v8, 0.0  ;;  %v3158_v16 = vrot.slane %v3151_v4, %v4071_v57 }
 0x5a7   : > { %3124 = vadd.xlane.f32.xlu0 %v3123_v0  ;;  %v3103_v11 = vsel %vm3102_vm11, %v3100_v3, 0.0 }
 0x5a8   : > { %v3104_v12 = vsel %vm3102_vm11, %v3101_v2, 0.0  ;;  %v3160_v14 = vsub.f32 %v3083_v43, %v3158_v16 }
 0x5a9   : > { %v3105_v63 = vadd.f32 %v3104_v12, %v3103_v11 }
 0x5aa   : > { %v3161_v15 = vmul.f32 %v3160_v14, %v3160_v14 }
 0x5ab   : > { %3106 = vadd.xlane.f32.xlu1 %v3105_v63 }
 0x5ac   : > { %v3166_v13 = vrot.slane %v3161_v15, %v4076_v61  ;;  %v3170_v31 = vrot.slane %v3161_v15, %v3094_v42 }
 0x5ae   : > { %v3173_v48 = vsel %vm3102_vm11, %v3166_v13, 0.0  ;;  %v3174_v21 = vsel %vm3102_vm11, %v3170_v31, 0.0 }
 0x5af   : > { %v3175_v18 = vadd.f32 %v3174_v21, %v3173_v48 }
 0x5b1   : > { %3176 = vadd.xlane.f32.xlu0 %v3175_v18 }
 0x634   : > { %v3125_v57 = vpop.xlane.xlu0 %3124 }
 0x635   : > { %v3129_v23 = vmul.f32 2.0, %v3125_v57 }
 0x638   : > { %v3107_v26 = vpop.xlane.xlu1 %3106 }
 0x639   : > { %v3128_v60 = vsub.f32 0.0, %v3107_v26 }
 0x63b   : > { %v3130_v20 = vadd.f32 %v3129_v23, %v3128_v60 }
 0x63d   : > { %v3131_v61 = vsub.f32 %v3130_v20, %v3126_v47 }
 0x63e   : > { %v3177_v22 = vpop.xlane.xlu0 %3176 }
 0x63f   : > { %v3132_v28 = vmul.f32 0.5, %v3131_v61  ;;  %v3178_v27 = vmul.f32 0.001953125, %v3177_v22 }
 0x641   : > { %3138 = vperm.xlu1 %3709, %v3132_v28  }
 0x6c0   : > { %v3139_v34 = vpop.permute.xlu1 %3138 }
 0x6c1   : > { %v3141_v25 = vsel %vm3135_vm12, %v3139_v34, 0.0 }
 0x6c2   : > { %v3180_v29 = vsel %vm3179_vm13, %v3178_v27, %v3141_v25 }
 0x6c3   : > { %3181 = vst [vmem:[%s593_s18] sm:$0x1] %v3180_v29 }
 0x6c4 PF: > { %s23_s29 = sadd.s32 1, %s3794_s29   ;;  %s4659_s19 = sld [smem:[#allocation2_spill]] }
 0x6c5   : > { %p20_p7 = scmp.ge.s32.totalorder %s23_s29, 8   ;;  %s4660_s23 = sld [smem:[#allocation3_spill]] }
 0x6c6   : > { %s4661_s25 = smov %s3786_s27  ;;  %s4662_s26 = smov %s3790_s28 }
 0x6c7   :  { %22 = sbr.rel (!%p20_p7) target bundleno = 3 (0x3), region = 140 }
 0x6ca   : > { %s4663_s27 = smov %s4659_s19 }
 0x6cb   : > { %s4664_s28 = smov %s4660_s23 }

</bundles_post_ra>
